<compile_context>
chip_gen: v7x
topology: tpu7x:2x2x1
jax: 0.10.0
libtpu: 0.0.40
codegen_flags: <defaults>
</compile_context>

<pallas_src>
import math

import jax
import jax.numpy as jnp
from jax.experimental import pallas as pl
from jax.experimental.pallas import tpu as pltpu


# ---------------------------------------------------------------------------
# RoPE tables (mirrors chess_seq RoPE.__init__: inv_freq with the last two
# entries overridden).  Built once up to max_seq; only the half-width tables
# are needed by the kernel.
# ---------------------------------------------------------------------------
def make_rope_tables(head_dim, max_seq):
    assert head_dim % 2 == 0 and head_dim >= 4
    half = head_dim // 2
    inv_freq = 1.0 / (10000.0 ** (jnp.arange(half, dtype=jnp.float32) / half))
    inv_freq = inv_freq.at[-1].set(2.0 * math.pi / 3.0)
    inv_freq = inv_freq.at[-2].set(2.0 * math.pi / 6.0)
    pos = jnp.arange(max_seq, dtype=jnp.float32)[:, None]        # (S, 1)
    ang = pos * inv_freq[None, :]                                # (S, half)
    return jnp.cos(ang), jnp.sin(ang)                            # (S, half) each


def _pairs_to_halves_perm(k, heads):
    """Column permutation: per head, interleaved pairs -> [evens | odds]."""
    s = k // heads
    half = s // 2
    idx = []
    for h in range(heads):
        base = h * s
        idx += [base + 2 * i for i in range(half)]       # "t1" features
        idx += [base + 2 * i + 1 for i in range(half)]   # "t2" features
    return jnp.array(idx, dtype=jnp.int32)


# ---------------------------------------------------------------------------
# Fused kernel: one grid step per batch element.
# ---------------------------------------------------------------------------
def _make_fused_kernel(heads, head_dim, scale, masking):
    half = head_dim // 2

    def kernel(*refs):
        if masking == "explicit":
            (x_ref, wq_ref, wk_ref, wv_ref, wu_ref, bu_ref,
             cos_ref, sin_ref, mask_ref, o_ref) = refs
        else:
            (x_ref, wq_ref, wk_ref, wv_ref, wu_ref, bu_ref,
             cos_ref, sin_ref, o_ref) = refs
            mask_ref = None

        x = x_ref[0]                                             # (N, k)
        n = x.shape[0]

        # Full-width projections: one (N,k)@(k,k) each, lane-dense MXU output.
        q = jnp.dot(x, wq_ref[...], preferred_element_type=jnp.float32)
        kk = jnp.dot(x, wk_ref[...], preferred_element_type=jnp.float32)
        v = jnp.dot(x, wv_ref[...], preferred_element_type=jnp.float32)

        c = cos_ref[...]                                         # (N, half)
        sn = sin_ref[...]                                        # (N, half)

        if masking == "causal":
            rows = jax.lax.broadcasted_iota(jnp.int32, (n, n), 0)
            cols = jax.lax.broadcasted_iota(jnp.int32, (n, n), 1)
            keep = rows >= cols
        elif masking == "explicit":
            keep = mask_ref[...] != 0
        else:
            keep = None

        def rope_head(t, lo):
            # t columns [lo, lo+s) are in per-head [t1 | t2] (halves) layout.
            t1 = t[:, lo:lo + half]
            t2 = t[:, lo + half:lo + head_dim]
            return jnp.concatenate([t1 * c + t2 * sn, t2 * c - t1 * sn],
                                   axis=-1)                      # (N, s)

        head_outs = []
        for hi in range(heads):
            lo = hi * head_dim
            qh = rope_head(q, lo)                                # (N, s)
            kh = rope_head(kk, lo)                               # (N, s)
            vh = v[:, lo:lo + head_dim]                          # (N, s)

            scores = jnp.einsum("qd,kd->qk", qh, kh,
                                preferred_element_type=jnp.float32) * scale
            if keep is not None:
                scores = jnp.where(keep, scores, -1e30)          # finite: no NaN rows

            m = jnp.max(scores, axis=-1, keepdims=True)
            e = jnp.exp(scores - m)
            attn = e * pl.reciprocal(jnp.sum(e, axis=-1, keepdims=True),
                                     approx=True)
            head_outs.append(jnp.dot(attn, vh,
                                     preferred_element_type=jnp.float32))

        heads_cat = jnp.concatenate(head_outs, axis=-1)          # (N, k) lane dense
        y = jnp.dot(heads_cat, wu_ref[...],
                    preferred_element_type=jnp.float32)
        y = y + bu_ref[...].astype(jnp.float32)
        o_ref[0] = y.astype(o_ref.dtype)

    return kernel


# ---------------------------------------------------------------------------
# Wrapper
# ---------------------------------------------------------------------------
def self_attention_forward(x, wq, wk, wv, wu, bu, heads, cos_h, sin_h,
                           mask=None, causal=False):
    b, N, k = x.shape
    assert k % heads == 0
    s = k // heads
    assert s % 2 == 0
    scale = 1.0 / math.sqrt(s)

    perm = _pairs_to_halves_perm(k, heads)
    wq_p = wq[:, perm]                       # (k, k) per-head halves layout
    wk_p = wk[:, perm]
    bu2 = bu.reshape(1, k)
    cosN = cos_h[:N]                         # (N, s//2)
    sinN = sin_h[:N]

    masking = "causal" if causal else ("explicit" if mask is not None else "none")

    in_specs = [
        pl.BlockSpec((1, N, k), lambda bi: (bi, 0, 0)),   # x
        pl.BlockSpec((k, k), lambda bi: (0, 0)),          # Wq (permuted)
        pl.BlockSpec((k, k), lambda bi: (0, 0)),          # Wk (permuted)
        pl.BlockSpec((k, k), lambda bi: (0, 0)),          # Wv
        pl.BlockSpec((k, k), lambda bi: (0, 0)),          # Wu
        pl.BlockSpec((1, k), lambda bi: (0, 0)),          # bu
        pl.BlockSpec((N, s // 2), lambda bi: (0, 0)),     # cos
        pl.BlockSpec((N, s // 2), lambda bi: (0, 0)),     # sin
    ]
    args = [x, wq_p, wk_p, wv, wu, bu2, cosN, sinN]
    if masking == "explicit":
        in_specs.append(pl.BlockSpec((N, N), lambda bi: (0, 0)))
        args.append(mask.astype(jnp.int32))

    # TODO(synk): at scale, cast MXU operands to bf16 (keep f32 accumulation)
    # and raise vmem_limit_bytes; kept f32 here to match the f32 reference.
    out = pl.pallas_call(
        _make_fused_kernel(heads, s, scale, masking),
        out_shape=jax.ShapeDtypeStruct((b, N, k), x.dtype),
        grid_spec=pltpu.PrefetchScalarGridSpec(
            num_scalar_prefetch=0,
            grid=(b,),
            in_specs=in_specs,
            out_specs=pl.BlockSpec((1, N, k), lambda bi: (bi, 0, 0)),
        ),
        compiler_params=pltpu.CompilerParams(
            dimension_semantics=("parallel",)),
    )(*args)
    return out


# ---------------------------------------------------------------------------
# Pure-JAX reference (mirrors the PyTorch forward) for verification.
# ---------------------------------------------------------------------------
def self_attention_reference(x, wq, wk, wv, wu, bu, heads, cos_h, sin_h,
                             mask=None):
    b, N, k = x.shape
    h = heads
    s = k // h
    hp = jax.lax.Precision.HIGHEST

    def proj(w):
        y = jnp.dot(x, w, precision=hp)                       # (b, N, k)
        return y.reshape(b, N, h, s).transpose(0, 2, 1, 3)    # (b, h, N, s)

    def rope(t):
        t1 = t[..., 0::2]
        t2 = t[..., 1::2]
        c = cos_h[:N][None, None]
        sn = sin_h[:N][None, None]
        r = jnp.stack([t1 * c + t2 * sn, -t1 * sn + t2 * c], axis=-1)
        return r.reshape(t.shape)

    Q = rope(proj(wq))
    K = rope(proj(wk))
    V = proj(wv)
    scores = jnp.einsum("bhqd,bhkd->bhqk", Q, K, precision=hp) / math.sqrt(s)
    if mask is not None:
        scores = jnp.where(mask[None, None] == 0, -jnp.inf, scores)
    attn = jax.nn.softmax(scores, axis=-1)
    out_h = jnp.einsum("bhqk,bhkd->bhqd", attn, V, precision=hp)
    out = out_h.transpose(0, 2, 1, 3).reshape(b, N, k)
    return jnp.dot(out, wu, precision=hp) + bu


if __name__ == "__main__":
    b, N, k, heads = 2, 16, 32, 4          # batch, seq, model dim, heads
    s = k // heads                          # head dim = 8
    max_seq = 64                            # RoPE table precomputed to max len

    key = jax.random.PRNGKey(0)
    kx, kq, kk_, kv, ku, kb = jax.random.split(key, 6)
    scale_w = 1.0 / math.sqrt(k)
    x = jax.random.normal(kx, (b, N, k), dtype=jnp.float32)
    wq = jax.random.normal(kq, (k, k), jnp.float32) * scale_w
    wk = jax.random.normal(kk_, (k, k), jnp.float32) * scale_w
    wv = jax.random.normal(kv, (k, k), jnp.float32) * scale_w
    wu = jax.random.normal(ku, (k, k), jnp.float32) * scale_w
    bu = jax.random.normal(kb, (k,), jnp.float32) * 0.1

    cos_h, sin_h = make_rope_tables(s, max_seq)
    causal_mask = jnp.tril(jnp.ones((N, N), jnp.int32))

    tol = dict(atol=3e-3, rtol=3e-3)

    # 1) causal mask generated in-kernel (no mask DMA)
    out_c = jax.block_until_ready(
        self_attention_forward(x, wq, wk, wv, wu, bu, heads, cos_h, sin_h,
                               causal=True))
    ref_m = self_attention_reference(x, wq, wk, wv, wu, bu, heads, cos_h, sin_h,
                                     mask=causal_mask)
    assert out_c.shape == (b, N, k)
    assert jnp.allclose(out_c, ref_m, **tol), (
        "causal mismatch, max abs err "
        f"{float(jnp.max(jnp.abs(out_c - ref_m)))}")

    # 2) explicit mask tensor path
    out_m = jax.block_until_ready(
        self_attention_forward(x, wq, wk, wv, wu, bu, heads, cos_h, sin_h,
                               mask=causal_mask))
    assert jnp.allclose(out_m, ref_m, **tol), (
        "explicit-mask mismatch, max abs err "
        f"{float(jnp.max(jnp.abs(out_m - ref_m)))}")

    # 3) mask=None path (where() statically skipped)
    out_n = jax.block_until_ready(
        self_attention_forward(x, wq, wk, wv, wu, bu, heads, cos_h, sin_h,
                               mask=None))
    ref_n = self_attention_reference(x, wq, wk, wv, wu, bu, heads, cos_h, sin_h,
                                     mask=None)
    assert jnp.allclose(out_n, ref_n, **tol), (
        "unmasked mismatch, max abs err "
        f"{float(jnp.max(jnp.abs(out_n - ref_n)))}")

    print("KERNEL_OK")
</pallas_src>

<mosaic_0001>
module attributes {stable_mosaic.version = 11 : i64} {
  func.func @kernel(%arg0: i32, %arg1: memref<1x16x32xf32, #tpu.memory_space<vmem>>, %arg2: memref<32x32xf32, #tpu.memory_space<vmem>>, %arg3: memref<32x32xf32, #tpu.memory_space<vmem>>, %arg4: memref<32x32xf32, #tpu.memory_space<vmem>>, %arg5: memref<32x32xf32, #tpu.memory_space<vmem>>, %arg6: memref<1x32xf32, #tpu.memory_space<vmem>>, %arg7: memref<16x4xf32, #tpu.memory_space<vmem>>, %arg8: memref<16x4xf32, #tpu.memory_space<vmem>>, %arg9: memref<1x16x32xf32, #tpu.memory_space<vmem>>) attributes {dimension_semantics = [#tpu.dimension_semantics<parallel>], iteration_bounds = array<i64: 2>, scalar_prefetch = 0 : i64, scratch_operands = 0 : i64, tpu.core_type = #tpu.core_type<tc>, window_params = [{transform_indices = @transform_0, window_bounds = array<i64: 1, 16, 32>}, {pipeline_mode = #tpu.pipeline_mode<synchronous>, transform_indices = @transform_1, window_bounds = array<i64: 32, 32>}, {pipeline_mode = #tpu.pipeline_mode<synchronous>, transform_indices = @transform_2, window_bounds = array<i64: 32, 32>}, {pipeline_mode = #tpu.pipeline_mode<synchronous>, transform_indices = @transform_3, window_bounds = array<i64: 32, 32>}, {pipeline_mode = #tpu.pipeline_mode<synchronous>, transform_indices = @transform_4, window_bounds = array<i64: 32, 32>}, {pipeline_mode = #tpu.pipeline_mode<synchronous>, transform_indices = @transform_5, window_bounds = array<i64: 1, 32>}, {pipeline_mode = #tpu.pipeline_mode<synchronous>, transform_indices = @transform_6, window_bounds = array<i64: 16, 4>}, {pipeline_mode = #tpu.pipeline_mode<synchronous>, transform_indices = @transform_7, window_bounds = array<i64: 16, 4>}, {transform_indices = @transform_8, window_bounds = array<i64: 1, 16, 32>}]} {
    %c0 = arith.constant 0 : index
    %c0_0 = arith.constant 0 : index
    %c0_1 = arith.constant 0 : index
    %0 = vector.load %arg1[%c0, %c0_0, %c0_1] : memref<1x16x32xf32, #tpu.memory_space<vmem>>, vector<1x16x32xf32>
    %1 = vector.shape_cast %0 : vector<1x16x32xf32> to vector<16x32xf32>
    %c0_2 = arith.constant 0 : index
    %c0_3 = arith.constant 0 : index
    %2 = vector.load %arg2[%c0_2, %c0_3] : memref<32x32xf32, #tpu.memory_space<vmem>>, vector<32x32xf32>
    %cst = arith.constant dense<0.000000e+00> : vector<16x32xf32>
    %3 = tpu.matmul %1, %2, %cst {dimension_numbers = #tpu.dot_dimension_numbers<[1], [0], [0], [1], [0, 0, 1, 1], [], []>} : vector<16x32xf32>, vector<32x32xf32>, vector<16x32xf32> -> vector<16x32xf32>
    %c0_4 = arith.constant 0 : index
    %c0_5 = arith.constant 0 : index
    %4 = vector.load %arg3[%c0_4, %c0_5] : memref<32x32xf32, #tpu.memory_space<vmem>>, vector<32x32xf32>
    %cst_6 = arith.constant dense<0.000000e+00> : vector<16x32xf32>
    %5 = tpu.matmul %1, %4, %cst_6 {dimension_numbers = #tpu.dot_dimension_numbers<[1], [0], [0], [1], [0, 0, 1, 1], [], []>} : vector<16x32xf32>, vector<32x32xf32>, vector<16x32xf32> -> vector<16x32xf32>
    %c0_7 = arith.constant 0 : index
    %c0_8 = arith.constant 0 : index
    %6 = vector.load %arg4[%c0_7, %c0_8] : memref<32x32xf32, #tpu.memory_space<vmem>>, vector<32x32xf32>
    %cst_9 = arith.constant dense<0.000000e+00> : vector<16x32xf32>
    %7 = tpu.matmul %1, %6, %cst_9 {dimension_numbers = #tpu.dot_dimension_numbers<[1], [0], [0], [1], [0, 0, 1, 1], [], []>} : vector<16x32xf32>, vector<32x32xf32>, vector<16x32xf32> -> vector<16x32xf32>
    %c0_10 = arith.constant 0 : index
    %c0_11 = arith.constant 0 : index
    %8 = vector.load %arg7[%c0_10, %c0_11] : memref<16x4xf32, #tpu.memory_space<vmem>>, vector<16x4xf32>
    %c0_12 = arith.constant 0 : index
    %c0_13 = arith.constant 0 : index
    %9 = vector.load %arg8[%c0_12, %c0_13] : memref<16x4xf32, #tpu.memory_space<vmem>>, vector<16x4xf32>
    %10 = tpu.iota {dimensions = array<i32: 0>} : vector<16x16xi32>
    %11 = tpu.iota {dimensions = array<i32: 1>} : vector<16x16xi32>
    %12 = arith.cmpi sge, %10, %11 : vector<16x16xi32>
    %13 = vector.extract_strided_slice %3 {offsets = [0, 0], sizes = [16, 4], strides = [1, 1]} : vector<16x32xf32> to vector<16x4xf32>
    %14 = vector.extract_strided_slice %3 {offsets = [0, 4], sizes = [16, 4], strides = [1, 1]} : vector<16x32xf32> to vector<16x4xf32>
    %15 = arith.mulf %13, %8 : vector<16x4xf32>
    %16 = arith.mulf %14, %9 : vector<16x4xf32>
    %17 = arith.addf %15, %16 : vector<16x4xf32>
    %18 = arith.mulf %14, %8 : vector<16x4xf32>
    %19 = arith.mulf %13, %9 : vector<16x4xf32>
    %20 = arith.subf %18, %19 : vector<16x4xf32>
    %21 = tpu.concatenate %17, %20 in 1 : vector<16x4xf32>, vector<16x4xf32> -> vector<16x8xf32>
    %22 = vector.extract_strided_slice %5 {offsets = [0, 0], sizes = [16, 4], strides = [1, 1]} : vector<16x32xf32> to vector<16x4xf32>
    %23 = vector.extract_strided_slice %5 {offsets = [0, 4], sizes = [16, 4], strides = [1, 1]} : vector<16x32xf32> to vector<16x4xf32>
    %24 = arith.mulf %22, %8 : vector<16x4xf32>
    %25 = arith.mulf %23, %9 : vector<16x4xf32>
    %26 = arith.addf %24, %25 : vector<16x4xf32>
    %27 = arith.mulf %23, %8 : vector<16x4xf32>
    %28 = arith.mulf %22, %9 : vector<16x4xf32>
    %29 = arith.subf %27, %28 : vector<16x4xf32>
    %30 = tpu.concatenate %26, %29 in 1 : vector<16x4xf32>, vector<16x4xf32> -> vector<16x8xf32>
    %31 = vector.extract_strided_slice %7 {offsets = [0, 0], sizes = [16, 8], strides = [1, 1]} : vector<16x32xf32> to vector<16x8xf32>
    "tpu.trace_start"() <{level = 10 : i32, message = "qd,kd->qk"}> : () -> ()
    %cst_14 = arith.constant dense<0.000000e+00> : vector<16x16xf32>
    %32 = tpu.matmul %21, %30, %cst_14 {dimension_numbers = #tpu.dot_dimension_numbers<[1], [1], [0], [0], [0, 0, 1, 0], [], []>} : vector<16x8xf32>, vector<16x8xf32>, vector<16x16xf32> -> vector<16x16xf32>
    "tpu.trace_stop"() : () -> ()
    %cst_15 = arith.constant 0.353553385 : f32
    %33 = vector.broadcast %cst_15 : f32 to vector<16x16xf32>
    %34 = arith.mulf %32, %33 : vector<16x16xf32>
    %cst_16 = arith.constant -1.000000e+30 : f32
    %35 = vector.broadcast %cst_16 : f32 to vector<16x16xf32>
    %36 = arith.select %12, %34, %35 : vector<16x16xi1>, vector<16x16xf32>
    %cst_17 = arith.constant dense<0xFF800000> : vector<16xf32>
    %37 = vector.multi_reduction <maximumf>, %36, %cst_17 [1] : vector<16x16xf32> to vector<16xf32>
    %38 = vector.shape_cast %37 : vector<16xf32> to vector<16x1xf32>
    %39 = vector.broadcast %38 : vector<16x1xf32> to vector<16x16xf32>
    %40 = arith.subf %36, %39 : vector<16x16xf32>
    %41 = math.exp %40 : vector<16x16xf32>
    %cst_18 = arith.constant dense<0.000000e+00> : vector<16xf32>
    %42 = vector.multi_reduction <add>, %41, %cst_18 [1] : vector<16x16xf32> to vector<16xf32>
    %43 = vector.shape_cast %42 : vector<16xf32> to vector<16x1xf32>
    %44 = tpu.reciprocal %43 {approx = true} : vector<16x1xf32> -> vector<16x1xf32>
    %45 = vector.broadcast %44 : vector<16x1xf32> to vector<16x16xf32>
    %46 = arith.mulf %41, %45 : vector<16x16xf32>
    %cst_19 = arith.constant dense<0.000000e+00> : vector<16x8xf32>
    %47 = tpu.matmul %46, %31, %cst_19 {dimension_numbers = #tpu.dot_dimension_numbers<[1], [0], [0], [1], [0, 0, 1, 1], [], []>} : vector<16x16xf32>, vector<16x8xf32>, vector<16x8xf32> -> vector<16x8xf32>
    %48 = vector.extract_strided_slice %3 {offsets = [0, 8], sizes = [16, 4], strides = [1, 1]} : vector<16x32xf32> to vector<16x4xf32>
    %49 = vector.extract_strided_slice %3 {offsets = [0, 12], sizes = [16, 4], strides = [1, 1]} : vector<16x32xf32> to vector<16x4xf32>
    %50 = arith.mulf %48, %8 : vector<16x4xf32>
    %51 = arith.mulf %49, %9 : vector<16x4xf32>
    %52 = arith.addf %50, %51 : vector<16x4xf32>
    %53 = arith.mulf %49, %8 : vector<16x4xf32>
    %54 = arith.mulf %48, %9 : vector<16x4xf32>
    %55 = arith.subf %53, %54 : vector<16x4xf32>
    %56 = tpu.concatenate %52, %55 in 1 : vector<16x4xf32>, vector<16x4xf32> -> vector<16x8xf32>
    %57 = vector.extract_strided_slice %5 {offsets = [0, 8], sizes = [16, 4], strides = [1, 1]} : vector<16x32xf32> to vector<16x4xf32>
    %58 = vector.extract_strided_slice %5 {offsets = [0, 12], sizes = [16, 4], strides = [1, 1]} : vector<16x32xf32> to vector<16x4xf32>
    %59 = arith.mulf %57, %8 : vector<16x4xf32>
    %60 = arith.mulf %58, %9 : vector<16x4xf32>
    %61 = arith.addf %59, %60 : vector<16x4xf32>
    %62 = arith.mulf %58, %8 : vector<16x4xf32>
    %63 = arith.mulf %57, %9 : vector<16x4xf32>
    %64 = arith.subf %62, %63 : vector<16x4xf32>
    %65 = tpu.concatenate %61, %64 in 1 : vector<16x4xf32>, vector<16x4xf32> -> vector<16x8xf32>
    %66 = vector.extract_strided_slice %7 {offsets = [0, 8], sizes = [16, 8], strides = [1, 1]} : vector<16x32xf32> to vector<16x8xf32>
    "tpu.trace_start"() <{level = 10 : i32, message = "qd,kd->qk"}> : () -> ()
    %cst_20 = arith.constant dense<0.000000e+00> : vector<16x16xf32>
    %67 = tpu.matmul %56, %65, %cst_20 {dimension_numbers = #tpu.dot_dimension_numbers<[1], [1], [0], [0], [0, 0, 1, 0], [], []>} : vector<16x8xf32>, vector<16x8xf32>, vector<16x16xf32> -> vector<16x16xf32>
    "tpu.trace_stop"() : () -> ()
    %cst_21 = arith.constant 0.353553385 : f32
    %68 = vector.broadcast %cst_21 : f32 to vector<16x16xf32>
    %69 = arith.mulf %67, %68 : vector<16x16xf32>
    %cst_22 = arith.constant -1.000000e+30 : f32
    %70 = vector.broadcast %cst_22 : f32 to vector<16x16xf32>
    %71 = arith.select %12, %69, %70 : vector<16x16xi1>, vector<16x16xf32>
    %cst_23 = arith.constant dense<0xFF800000> : vector<16xf32>
    %72 = vector.multi_reduction <maximumf>, %71, %cst_23 [1] : vector<16x16xf32> to vector<16xf32>
    %73 = vector.shape_cast %72 : vector<16xf32> to vector<16x1xf32>
    %74 = vector.broadcast %73 : vector<16x1xf32> to vector<16x16xf32>
    %75 = arith.subf %71, %74 : vector<16x16xf32>
    %76 = math.exp %75 : vector<16x16xf32>
    %cst_24 = arith.constant dense<0.000000e+00> : vector<16xf32>
    %77 = vector.multi_reduction <add>, %76, %cst_24 [1] : vector<16x16xf32> to vector<16xf32>
    %78 = vector.shape_cast %77 : vector<16xf32> to vector<16x1xf32>
    %79 = tpu.reciprocal %78 {approx = true} : vector<16x1xf32> -> vector<16x1xf32>
    %80 = vector.broadcast %79 : vector<16x1xf32> to vector<16x16xf32>
    %81 = arith.mulf %76, %80 : vector<16x16xf32>
    %cst_25 = arith.constant dense<0.000000e+00> : vector<16x8xf32>
    %82 = tpu.matmul %81, %66, %cst_25 {dimension_numbers = #tpu.dot_dimension_numbers<[1], [0], [0], [1], [0, 0, 1, 1], [], []>} : vector<16x16xf32>, vector<16x8xf32>, vector<16x8xf32> -> vector<16x8xf32>
    %83 = vector.extract_strided_slice %3 {offsets = [0, 16], sizes = [16, 4], strides = [1, 1]} : vector<16x32xf32> to vector<16x4xf32>
    %84 = vector.extract_strided_slice %3 {offsets = [0, 20], sizes = [16, 4], strides = [1, 1]} : vector<16x32xf32> to vector<16x4xf32>
    %85 = arith.mulf %83, %8 : vector<16x4xf32>
    %86 = arith.mulf %84, %9 : vector<16x4xf32>
    %87 = arith.addf %85, %86 : vector<16x4xf32>
    %88 = arith.mulf %84, %8 : vector<16x4xf32>
    %89 = arith.mulf %83, %9 : vector<16x4xf32>
    %90 = arith.subf %88, %89 : vector<16x4xf32>
    %91 = tpu.concatenate %87, %90 in 1 : vector<16x4xf32>, vector<16x4xf32> -> vector<16x8xf32>
    %92 = vector.extract_strided_slice %5 {offsets = [0, 16], sizes = [16, 4], strides = [1, 1]} : vector<16x32xf32> to vector<16x4xf32>
    %93 = vector.extract_strided_slice %5 {offsets = [0, 20], sizes = [16, 4], strides = [1, 1]} : vector<16x32xf32> to vector<16x4xf32>
    %94 = arith.mulf %92, %8 : vector<16x4xf32>
    %95 = arith.mulf %93, %9 : vector<16x4xf32>
    %96 = arith.addf %94, %95 : vector<16x4xf32>
    %97 = arith.mulf %93, %8 : vector<16x4xf32>
    %98 = arith.mulf %92, %9 : vector<16x4xf32>
    %99 = arith.subf %97, %98 : vector<16x4xf32>
    %100 = tpu.concatenate %96, %99 in 1 : vector<16x4xf32>, vector<16x4xf32> -> vector<16x8xf32>
    %101 = vector.extract_strided_slice %7 {offsets = [0, 16], sizes = [16, 8], strides = [1, 1]} : vector<16x32xf32> to vector<16x8xf32>
    "tpu.trace_start"() <{level = 10 : i32, message = "qd,kd->qk"}> : () -> ()
    %cst_26 = arith.constant dense<0.000000e+00> : vector<16x16xf32>
    %102 = tpu.matmul %91, %100, %cst_26 {dimension_numbers = #tpu.dot_dimension_numbers<[1], [1], [0], [0], [0, 0, 1, 0], [], []>} : vector<16x8xf32>, vector<16x8xf32>, vector<16x16xf32> -> vector<16x16xf32>
    "tpu.trace_stop"() : () -> ()
    %cst_27 = arith.constant 0.353553385 : f32
    %103 = vector.broadcast %cst_27 : f32 to vector<16x16xf32>
    %104 = arith.mulf %102, %103 : vector<16x16xf32>
    %cst_28 = arith.constant -1.000000e+30 : f32
    %105 = vector.broadcast %cst_28 : f32 to vector<16x16xf32>
    %106 = arith.select %12, %104, %105 : vector<16x16xi1>, vector<16x16xf32>
    %cst_29 = arith.constant dense<0xFF800000> : vector<16xf32>
    %107 = vector.multi_reduction <maximumf>, %106, %cst_29 [1] : vector<16x16xf32> to vector<16xf32>
    %108 = vector.shape_cast %107 : vector<16xf32> to vector<16x1xf32>
    %109 = vector.broadcast %108 : vector<16x1xf32> to vector<16x16xf32>
    %110 = arith.subf %106, %109 : vector<16x16xf32>
    %111 = math.exp %110 : vector<16x16xf32>
    %cst_30 = arith.constant dense<0.000000e+00> : vector<16xf32>
    %112 = vector.multi_reduction <add>, %111, %cst_30 [1] : vector<16x16xf32> to vector<16xf32>
    %113 = vector.shape_cast %112 : vector<16xf32> to vector<16x1xf32>
    %114 = tpu.reciprocal %113 {approx = true} : vector<16x1xf32> -> vector<16x1xf32>
    %115 = vector.broadcast %114 : vector<16x1xf32> to vector<16x16xf32>
    %116 = arith.mulf %111, %115 : vector<16x16xf32>
    %cst_31 = arith.constant dense<0.000000e+00> : vector<16x8xf32>
    %117 = tpu.matmul %116, %101, %cst_31 {dimension_numbers = #tpu.dot_dimension_numbers<[1], [0], [0], [1], [0, 0, 1, 1], [], []>} : vector<16x16xf32>, vector<16x8xf32>, vector<16x8xf32> -> vector<16x8xf32>
    %118 = vector.extract_strided_slice %3 {offsets = [0, 24], sizes = [16, 4], strides = [1, 1]} : vector<16x32xf32> to vector<16x4xf32>
    %119 = vector.extract_strided_slice %3 {offsets = [0, 28], sizes = [16, 4], strides = [1, 1]} : vector<16x32xf32> to vector<16x4xf32>
    %120 = arith.mulf %118, %8 : vector<16x4xf32>
    %121 = arith.mulf %119, %9 : vector<16x4xf32>
    %122 = arith.addf %120, %121 : vector<16x4xf32>
    %123 = arith.mulf %119, %8 : vector<16x4xf32>
    %124 = arith.mulf %118, %9 : vector<16x4xf32>
    %125 = arith.subf %123, %124 : vector<16x4xf32>
    %126 = tpu.concatenate %122, %125 in 1 : vector<16x4xf32>, vector<16x4xf32> -> vector<16x8xf32>
    %127 = vector.extract_strided_slice %5 {offsets = [0, 24], sizes = [16, 4], strides = [1, 1]} : vector<16x32xf32> to vector<16x4xf32>
    %128 = vector.extract_strided_slice %5 {offsets = [0, 28], sizes = [16, 4], strides = [1, 1]} : vector<16x32xf32> to vector<16x4xf32>
    %129 = arith.mulf %127, %8 : vector<16x4xf32>
    %130 = arith.mulf %128, %9 : vector<16x4xf32>
    %131 = arith.addf %129, %130 : vector<16x4xf32>
    %132 = arith.mulf %128, %8 : vector<16x4xf32>
    %133 = arith.mulf %127, %9 : vector<16x4xf32>
    %134 = arith.subf %132, %133 : vector<16x4xf32>
    %135 = tpu.concatenate %131, %134 in 1 : vector<16x4xf32>, vector<16x4xf32> -> vector<16x8xf32>
    %136 = vector.extract_strided_slice %7 {offsets = [0, 24], sizes = [16, 8], strides = [1, 1]} : vector<16x32xf32> to vector<16x8xf32>
    "tpu.trace_start"() <{level = 10 : i32, message = "qd,kd->qk"}> : () -> ()
    %cst_32 = arith.constant dense<0.000000e+00> : vector<16x16xf32>
    %137 = tpu.matmul %126, %135, %cst_32 {dimension_numbers = #tpu.dot_dimension_numbers<[1], [1], [0], [0], [0, 0, 1, 0], [], []>} : vector<16x8xf32>, vector<16x8xf32>, vector<16x16xf32> -> vector<16x16xf32>
    "tpu.trace_stop"() : () -> ()
    %cst_33 = arith.constant 0.353553385 : f32
    %138 = vector.broadcast %cst_33 : f32 to vector<16x16xf32>
    %139 = arith.mulf %137, %138 : vector<16x16xf32>
    %cst_34 = arith.constant -1.000000e+30 : f32
    %140 = vector.broadcast %cst_34 : f32 to vector<16x16xf32>
    %141 = arith.select %12, %139, %140 : vector<16x16xi1>, vector<16x16xf32>
    %cst_35 = arith.constant dense<0xFF800000> : vector<16xf32>
    %142 = vector.multi_reduction <maximumf>, %141, %cst_35 [1] : vector<16x16xf32> to vector<16xf32>
    %143 = vector.shape_cast %142 : vector<16xf32> to vector<16x1xf32>
    %144 = vector.broadcast %143 : vector<16x1xf32> to vector<16x16xf32>
    %145 = arith.subf %141, %144 : vector<16x16xf32>
    %146 = math.exp %145 : vector<16x16xf32>
    %cst_36 = arith.constant dense<0.000000e+00> : vector<16xf32>
    %147 = vector.multi_reduction <add>, %146, %cst_36 [1] : vector<16x16xf32> to vector<16xf32>
    %148 = vector.shape_cast %147 : vector<16xf32> to vector<16x1xf32>
    %149 = tpu.reciprocal %148 {approx = true} : vector<16x1xf32> -> vector<16x1xf32>
    %150 = vector.broadcast %149 : vector<16x1xf32> to vector<16x16xf32>
    %151 = arith.mulf %146, %150 : vector<16x16xf32>
    %cst_37 = arith.constant dense<0.000000e+00> : vector<16x8xf32>
    %152 = tpu.matmul %151, %136, %cst_37 {dimension_numbers = #tpu.dot_dimension_numbers<[1], [0], [0], [1], [0, 0, 1, 1], [], []>} : vector<16x16xf32>, vector<16x8xf32>, vector<16x8xf32> -> vector<16x8xf32>
    %153 = tpu.concatenate %47, %82, %117, %152 in 1 : vector<16x8xf32>, vector<16x8xf32>, vector<16x8xf32>, vector<16x8xf32> -> vector<16x32xf32>
    %c0_38 = arith.constant 0 : index
    %c0_39 = arith.constant 0 : index
    %154 = vector.load %arg5[%c0_38, %c0_39] : memref<32x32xf32, #tpu.memory_space<vmem>>, vector<32x32xf32>
    %cst_40 = arith.constant dense<0.000000e+00> : vector<16x32xf32>
    %155 = tpu.matmul %153, %154, %cst_40 {dimension_numbers = #tpu.dot_dimension_numbers<[1], [0], [0], [1], [0, 0, 1, 1], [], []>} : vector<16x32xf32>, vector<32x32xf32>, vector<16x32xf32> -> vector<16x32xf32>
    %c0_41 = arith.constant 0 : index
    %c0_42 = arith.constant 0 : index
    %156 = vector.load %arg6[%c0_41, %c0_42] : memref<1x32xf32, #tpu.memory_space<vmem>>, vector<1x32xf32>
    %157 = vector.broadcast %156 : vector<1x32xf32> to vector<16x32xf32>
    %158 = arith.addf %155, %157 : vector<16x32xf32>
    %c0_43 = arith.constant 0 : index
    %c0_44 = arith.constant 0 : index
    %c0_45 = arith.constant 0 : index
    %159 = vector.load %arg9[%c0_43, %c0_44, %c0_45] : memref<1x16x32xf32, #tpu.memory_space<vmem>>, vector<1x16x32xf32>
    %160 = vector.shape_cast %159 : vector<1x16x32xf32> to vector<16x32xf32>
    %161 = vector.shape_cast %158 : vector<16x32xf32> to vector<1x16x32xf32>
    tpu.vector_store %arg9[%c0_43, %c0_44, %c0_45], %161 {strides = array<i32>} : memref<1x16x32xf32, #tpu.memory_space<vmem>>, vector<1x16x32xf32>,
    return
  }
  func.func @transform_0(%arg0: i32) -> (i32, i32, i32) {
    %c0_i32 = arith.constant 0 : i32
    %c0_i32_0 = arith.constant 0 : i32
    %c0_i32_1 = arith.constant 0 : i32
    return %arg0, %c0_i32, %c0_i32_0 : i32, i32, i32
  }
  func.func @transform_1(%arg0: i32) -> (i32, i32) {
    %c0_i32 = arith.constant 0 : i32
    %c0_i32_0 = arith.constant 0 : i32
    %c0_i32_1 = arith.constant 0 : i32
    return %c0_i32, %c0_i32_0 : i32, i32
  }
  func.func @transform_2(%arg0: i32) -> (i32, i32) {
    %c0_i32 = arith.constant 0 : i32
    %c0_i32_0 = arith.constant 0 : i32
    %c0_i32_1 = arith.constant 0 : i32
    return %c0_i32, %c0_i32_0 : i32, i32
  }
  func.func @transform_3(%arg0: i32) -> (i32, i32) {
    %c0_i32 = arith.constant 0 : i32
    %c0_i32_0 = arith.constant 0 : i32
    %c0_i32_1 = arith.constant 0 : i32
    return %c0_i32, %c0_i32_0 : i32, i32
  }
  func.func @transform_4(%arg0: i32) -> (i32, i32) {
    %c0_i32 = arith.constant 0 : i32
    %c0_i32_0 = arith.constant 0 : i32
    %c0_i32_1 = arith.constant 0 : i32
    return %c0_i32, %c0_i32_0 : i32, i32
  }
  func.func @transform_5(%arg0: i32) -> (i32, i32) {
    %c0_i32 = arith.constant 0 : i32
    %c0_i32_0 = arith.constant 0 : i32
    %c0_i32_1 = arith.constant 0 : i32
    return %c0_i32, %c0_i32_0 : i32, i32
  }
  func.func @transform_6(%arg0: i32) -> (i32, i32) {
    %c0_i32 = arith.constant 0 : i32
    %c0_i32_0 = arith.constant 0 : i32
    %c0_i32_1 = arith.constant 0 : i32
    return %c0_i32, %c0_i32_0 : i32, i32
  }
  func.func @transform_7(%arg0: i32) -> (i32, i32) {
    %c0_i32 = arith.constant 0 : i32
    %c0_i32_0 = arith.constant 0 : i32
    %c0_i32_1 = arith.constant 0 : i32
    return %c0_i32, %c0_i32_0 : i32, i32
  }
  func.func @transform_8(%arg0: i32) -> (i32, i32, i32) {
    %c0_i32 = arith.constant 0 : i32
    %c0_i32_0 = arith.constant 0 : i32
    %c0_i32_1 = arith.constant 0 : i32
    return %arg0, %c0_i32, %c0_i32_0 : i32, i32, i32
  }
}

</mosaic_0001>

<bundles_post_ra>
// kernel: tpu_custom_call.1
= control target key start
LH: loop header
LB: loop body
LE: loop exit
PB: predicated region body
PF: predicated region fallthrough
CT: control target
= control target key end

     0   :  { %13 = vsyncpa [#allocation3], 0  ;;  %s3404_s0 = inlined_call_operand.vmem [shape: f32[2,16,32], index: 0, kind: input, shape index: {}]   ;;  %s3405_s1 = inlined_call_operand.hbm [shape: f32[32,32], index: 1, kind: input, shape index: {}]   ;;  %s3406_s2 = inlined_call_operand.hbm [shape: f32[32,32], index: 2, kind: input, shape index: {}]   ;;  %s3407_s3 = inlined_call_operand.hbm [shape: f32[32,32], index: 3, kind: input, shape index: {}]   ;;  %s3408_s4 = inlined_call_operand.hbm [shape: f32[32,32], index: 4, kind: input, shape index: {}]   ;;  %s3409_s5 = inlined_call_operand.vmem [shape: f32[1,32], index: 5, kind: input, shape index: {}]   ;;  %s3410_s6 = inlined_call_operand.vmem [shape: f32[16,4], index: 6, kind: input, shape index: {}]   ;;  %s3411_s7 = inlined_call_operand.vmem [shape: f32[16,4], index: 7, kind: input, shape index: {}]   ;;  %s3412_s8 = inlined_call_operand.hbm [shape: f32[2,16,32], index: 8, kind: output, shape index: {}]  }
   0x1   :  { %14 = vsyncpa [#allocation6], 0 }
   0x2   :  { %15 = vsyncpa [#allocation9], 0 }
   0x3   :  { %16 = vsyncpa [#allocation4], 0 }
   0x4   :  { %18 = vsyncpa [#allocation4 + $0x1], 0  ;;  %s2791_s27 = smov 0   ;;  %s2793_s28 = smov 0  }
   0x5   :  { %s2795_s29 = smov 0   ;;  %s2797_s30 = smov 0  }
   0x6 LB: > { %3420 = sst [smem:[#allocation15_spill]] %s2721_s29  ;;  %s2812_s9 = sadd.s32 4294967295, %s2725_s30   ;;  %s2725_s30 = sphi %s2797_s30, %s3441_s30   ;;  %s2721_s29 = sphi %s2795_s29, %s3443_s29   ;;  %s2717_s28 = sphi %s2793_s28, %s3445_s28   ;;  %s2713_s27 = sphi %s2791_s27, %s3444_s27  }
   0x7   : > { %s2085_s10 = sadd.s32 4294967294, %s2725_s30   ;;  %s2816_s11 = sadd.s32 1, %s2725_s30  }
   0x8   : > { %3421 = sst [smem:[#allocation16_spill]] %s2816_s11  ;;  %s204_s12 = sadd.s32 1, %s2721_s29 }
   0x9   : > { %s201_s13 = ssub.s32 %s2725_s30, %s2816_s11  ;;  %p214_p0 = scmp.ne.s32.totalorder %s2721_s29, %s2717_s28 }
   0xa   : > { %p202_p1 = scmp.eq.s32.totalorder %s201_s13, 0  ;;  %p215_p2 = scmp.eq.s32.totalorder %s2812_s9, 1 }
   0xb   : > { %p220_p3 = scmp.ne.s32.totalorder %s2717_s28, %s2713_s27  ;;  %p221_p4 = scmp.eq.s32.totalorder %s2085_s10, 1 }
   0xc   : > { %s2827_s14 = scalar_select %p202_p1, %s2721_s29, %s204_s12  }
   0xd   : > { %p2829_p5 = por %p215_p2, %p214_p0  ;;  %p2833_p6 = por %p221_p4, %p220_p3 }
   0xe   : > { %3422 = sst [smem:[#allocation17_spill]] %s2827_s14  ;;  %p2086_p7 = scmp.ge.s32.totalorder %s2725_s30, 1 }
   0xf   : > { %s3423_s15 = scalar_select %p2829_p5, 1, 0 }
  0x10   : > { %s3424_s16 = scalar_select %p2833_p6, 1, 0 }
  0x11   : > { %p228_p8 = scmp.lt.s32.totalorder %s2725_s30, 3  ;;  %p3413_p9 = scmp.eq.s32.totalorder %s2812_s9, 0 }
  0x12   : > { %3425 = sst [smem:[#allocation18_spill]] %s3424_s16  ;;  %s2727_s18 = smov [#allocation5]  }
  0x13   : > { %p2840_p10 = pnand %p2086_p7, %p228_p8  ;;  %s253_s19 = sshll.u32 %s2727_s18, 4  ;;  %s2846_s19 = int_to_ptr.vmem [resolvable:$true] %s253_s19 }
  0x14   : > { %s2728_s21 = smov [#allocation2]   ;;  %s2729_s23 = smov [#allocation7]  }
  0x15   : > { %s3426_s17 = scalar_select %p2840_p10, 1, 0 }
  0x16   : > { %p2386_p11 = pneg %p2840_p10  ;;  %s240_s22 = sshll.u32 %s2728_s21, 4  ;;  %s2854_s22 = int_to_ptr.vmem [resolvable:$true] %s240_s22 }
  0x17   : > { %s2856_s24 = sshll.u32 %s2729_s23, 4  ;;  %s2539_s10 = scalar_lea.hbm %s3406_s2, 512  ;;  %s267_s24 = int_to_ptr.vmem [resolvable:$true] %s2856_s24 }
  0x18   : > { %p2850_p12 = pnand %p3413_p9, %p2386_p11  ;;  %p2540_p13 = scmp.ne.s32.totalorder %s3406_s2, %s2539_s10 }
  0x19   : > { %p2546_p3 = scmp.lt.u32.totalorder %s2539_s10, %s3406_s2 }
  0x1a   : > { %p2866_p0 = pneg %p2850_p12 }
  0x1c   : > { %p2542_p1 = pnand %p2866_p0, %p2540_p13 }
  0x1e   : > { %p2543_p2 = pneg %p2542_p1 }
  0x20   : > { %p2548_p4 = pnand %p2546_p3, %p2543_p2 }
  0x22   : > { %2551 = shalt.err (!%p2548_p4)
}
  0x23   : > { %s2552_s25 = scalar_lea.vmem %s2846_s19, 512  ;;  %p2560_p9 = scmp.lt.s32.totalorder %s2846_s19, %s2846_s19 }
  0x24   : > { %p2553_p7 = scmp.ne.s32.totalorder %s2846_s19, %s2552_s25  ;;  %p2561_p6 = scmp.lt.s32.totalorder %s2552_s25, %s2552_s25 }
  0x26   : > { %p2555_p8 = pnand %p2553_p7, %p2866_p0  ;;  %p2562_p13 = por %p2561_p6, %p2560_p9 }
  0x28   : > { %p2556_p11 = pneg %p2555_p8 }
  0x2a   : > { %p2563_p1 = pnand %p2562_p13, %p2556_p11 }
  0x2c   : > { %2566 = shalt.err (!%p2563_p1)
}
  0x2d   : > { %s2730_s26 = smov 128   ;;  %s2731_s10 = smov 8  }
  0x2e   : > { %2392 = dma.hbm_to_vmem [thread:$0]  (!%p2850_p12), %s3406_s2, 512, %s2846_s19, [#allocation6], %s2730_s26, %s2730_s26, %s2731_s10  }
  0x2f   : > { %s2567_s25 = scalar_lea.hbm %s3405_s1, 512 }
  0x30   : > { %p2568_p6 = scmp.ne.s32.totalorder %s3405_s1, %s2567_s25  ;;  %p2574_p3 = scmp.lt.u32.totalorder %s2567_s25, %s3405_s1 }
  0x32   : > { %p2570_p9 = pnand %p2568_p6, %p2866_p0 }
  0x34   : > { %p2571_p2 = pneg %p2570_p9 }
  0x36   : > { %p2576_p4 = pnand %p2574_p3, %p2571_p2 }
  0x38   : > { %2579 = shalt.err (!%p2576_p4)
}
  0x39   : > { %s2580_s19 = scalar_lea.vmem %s2854_s22, 512  ;;  %p2588_p13 = scmp.lt.s32.totalorder %s2854_s22, %s2854_s22 }
  0x3a   : > { %p2581_p7 = scmp.ne.s32.totalorder %s2854_s22, %s2580_s19  ;;  %p2589_p1 = scmp.lt.s32.totalorder %s2580_s19, %s2580_s19 }
  0x3c   : > { %p2583_p8 = pnand %p2581_p7, %p2866_p0  ;;  %p2590_p6 = por %p2589_p1, %p2588_p13 }
  0x3e   : > { %p2584_p11 = pneg %p2583_p8 }
  0x40   : > { %p2591_p9 = pnand %p2590_p6, %p2584_p11 }
  0x42   : > { %2594 = shalt.err (!%p2591_p9)
}
  0x43   : > { %2389 = dma.hbm_to_vmem [thread:$0]  (!%p2850_p12), %s3405_s1, 512, %s2854_s22, [#allocation3], %s2730_s26, %s2730_s26, %s2731_s10  }
  0x44   : > { %s2595_s12 = scalar_lea.hbm %s3407_s3, 512 }
  0x45   : > { %p2596_p2 = scmp.ne.s32.totalorder %s3407_s3, %s2595_s12  ;;  %p2602_p7 = scmp.lt.u32.totalorder %s2595_s12, %s3407_s3 }
  0x47   : > { %p2598_p3 = pnand %p2596_p2, %p2866_p0 }
  0x49   : > { %p2599_p4 = pneg %p2598_p3 }
  0x4b   : > { %p2604_p8 = pnand %p2602_p7, %p2599_p4 }
  0x4d   : > { %2607 = shalt.err (!%p2604_p8)
}
  0x4e   : > { %s2608_s19 = scalar_lea.vmem %s267_s24, 512  ;;  %p2616_p6 = scmp.lt.s32.totalorder %s267_s24, %s267_s24 }
  0x4f   : > { %p2609_p11 = scmp.ne.s32.totalorder %s267_s24, %s2608_s19  ;;  %p2617_p9 = scmp.lt.s32.totalorder %s2608_s19, %s2608_s19 }
  0x51   : > { %p2611_p13 = pnand %p2609_p11, %p2866_p0  ;;  %p2618_p5 = por %p2617_p9, %p2616_p6 }
  0x53   : > { %p2612_p1 = pneg %p2611_p13 }
  0x55   : > { %p2619_p10 = pnand %p2618_p5, %p2612_p1 }
  0x57   : > { %2622 = shalt.err (!%p2619_p10)
}
  0x58   : > { %2395 = dma.hbm_to_vmem [thread:$0]  (!%p2850_p12), %s3407_s3, 512, %s267_s24, [#allocation6], %s2730_s26, %s2730_s26, %s2731_s10  }
  0x59   : > { %s2732_s11 = smov [#allocation8]   ;;  %s2623_s13 = scalar_lea.hbm %s3408_s4, 512 }
  0x5a   : > { %s279_s14 = sshll.u32 %s2732_s11, 4  ;;  %p2624_p5 = scmp.ne.s32.totalorder %s3408_s4, %s2623_s13  ;;  %s280_s14 = int_to_ptr.vmem [resolvable:$true] %s279_s14 }
  0x5b   : > { %p2630_p3 = scmp.lt.u32.totalorder %s2623_s13, %s3408_s4 }
  0x5c   : > { %p2626_p10 = pnand %p2624_p5, %p2866_p0 }
  0x5e   : > { %p2627_p2 = pneg %p2626_p10 }
  0x60   : > { %p2632_p4 = pnand %p2630_p3, %p2627_p2 }
  0x62   : > { %2635 = shalt.err (!%p2632_p4)
}
  0x63   : > { %s2636_s24 = scalar_lea.vmem %s280_s14, 512  ;;  %p2644_p13 = scmp.lt.s32.totalorder %s280_s14, %s280_s14 }
  0x64   : > { %p2637_p7 = scmp.ne.s32.totalorder %s280_s14, %s2636_s24  ;;  %p2645_p1 = scmp.lt.s32.totalorder %s2636_s24, %s2636_s24 }
  0x66   : > { %p2639_p8 = pnand %p2637_p7, %p2866_p0  ;;  %p2646_p6 = por %p2645_p1, %p2644_p13 }
  0x68   : > { %p2640_p11 = pneg %p2639_p8 }
  0x6a   : > { %p2647_p9 = pnand %p2646_p6, %p2640_p11 }
  0x6c   : > { %2650 = shalt.err (!%p2647_p9)
}
  0x6d   : > { %2398 = dma.hbm_to_vmem [thread:$0]  (!%p2850_p12), %s3408_s4, 512, %s280_s14, [#allocation9], %s2730_s26, %s2730_s26, %s2731_s10  }
  0x6e   : > { %p3429_p5 = scmp.ne.s32.totalorder %s3426_s17, 0 }
  0x6f   : > { %p3430_p0 = scmp.eq.s32.totalorder (!%p3429_p5), %s2812_s9, 0 }
  0x70   : > { %312 = sbr.rel (%p3429_p5) target bundleno = 3320 (0xcf8), region = 52 }
  0x77   : > { %2696 = dma.done.wait (%p3430_p0), [#allocation3], 512   ;;  %p3431_p10 = pmov %p3430_p0 }
  0x78   : > { %p3432_p2 = pmov %p3430_p0 }
  0x79   : > { %2698 = vsyncadd (%p3431_p10), [#allocation3], 4294966784 }
  0x7a   : > { %2700 = dma.done.wait (%p3432_p2), [#allocation6], 1024   ;;  %p3433_p3 = pmov %p3430_p0 }
  0x7b   : > { %p3434_p4 = pmov %p3430_p0 }
  0x7c   : > { %2702 = vsyncadd (%p3433_p3), [#allocation6], 4294966272 }
  0x7d   : > { %2704 = dma.done.wait (%p3434_p4), [#allocation9], 512   ;;  %p3435_p12 = pmov %p3430_p0 }
  0x7e   : > { %p358_p7 = scmp.lt.s32.totalorder %s2812_s9, 1  ;;  %v365_v0 = vld [vmem:[#allocation2] sm:$0xff]  ;;  %v366_v1 = vld [vmem:[#allocation2 + $0x8] sm:$0xff]  ;;  %vm369_vm0 = vcmask 261120   ;;  %v367_v5 = vld [vmem:[#allocation2 + $0x10] sm:$0xff]  ;;  %s2733_s13 = smov 4  }
  0x7f   : > { %2706 = vsyncadd (%p3435_p12), [#allocation9], 4294966784  ;;  %v451_v2 = vld [vmem:[#allocation5] sm:$0xff]  ;;  %v2296_v3 = vpack.c.bf16 %v366_v1, %v365_v0  ;;  %v452_v4 = vld [vmem:[#allocation5 + $0x8] sm:$0xff]  ;;  %s2734_s24 = smov 124   ;;  %s2735_s22 = smov 12  }
  0x80   : > { %s359_s17 = scalar_select %p358_p7, %s2812_s9, 1  ;;  %v368_v6 = vld [vmem:[#allocation2 + $0x18] sm:$0xff]  ;;  %v2304_v7 = vpack.c.bf16 %v452_v4, %v451_v2  ;;  %v453_v9 = vld [vmem:[#allocation5 + $0x10] sm:$0xff]  ;;  %v2982_v13 = vld [vmem:[%s3411_s7] sm:$0xff]  ;;  %vm664_vm1 = vcmask 31744   ;;  %vm697_vm2 = vcmask 64512  }
  0x81   : > { %v2300_v8 = vpack.c.bf16 %v368_v6, %v367_v5  ;;  %v454_v10 = vld [vmem:[#allocation5 + $0x18] sm:$0xff]  ;;  %2297 = vmatprep.subr.bf16.mxu0 %v2296_v3  ;;  %v2987_v14 = vld [vmem:[%s3410_s6] sm:$0xff]  ;;  %624 = vrot.lane.b32.xlu0 %v2982_v13, %s2733_s13  ;;  %v2999_v16 = vld [vmem:[%s3411_s7 + $0x8] sm:$0xff]  ;;  %s2736_s29 = smov 8   ;;  %v613_v6 = vlaneseq  ;;  %vm789_vm5 = vcmask 130048   ;;  %s2739_s18 = smov 16  }
  0x82   : > { %s2138_s20 = sshll.u32 %s359_s17, 4  ;;  %v2308_v12 = vpack.c.bf16 %v454_v10, %v453_v9  ;;  %2305 = vmatprep.subr.bf16.mxu1 %v2304_v7  ;;  %2299 = vmatpush3.bf16.msra.mxu0 %v2296_v3  ;;  %v3004_v17 = vld [vmem:[%s3410_s6 + $0x8] sm:$0xff]  ;;  %vm3064_vm3 = vmpackc.low %vm697_vm2, %vm697_vm2  ;;  %v530_v0 = vld [vmem:[#allocation7] sm:$0xff]  ;;  %s2737_s17 = smov 120   ;;  %vm1871_vm7 = vcmask 195584  }
  0x83   : > { %s362_s10 = scalar_lea.vmem %s3404_s0, %s2138_s20  ;;  %2307 = vmatpush3.bf16.msra.mxu1 %v2304_v7  ;;  %2301 = vmatprep.subr.bf16.mxu0 %v2300_v8  ;;  %v531_v1 = vld [vmem:[#allocation7 + $0x8] sm:$0xff]  ;;  %v532_v2 = vld [vmem:[#allocation7 + $0x10] sm:$0xff]  ;;  %v533_v4 = vld [vmem:[#allocation7 + $0x18] sm:$0xff]  ;;  %v3081_v7 = vshrl.u32 %v613_v6, 7  ;;  %v3086_v9 = vand.u32 127, %v613_v6  ;;  %s2738_s20 = smov 20  }
  0x84   : > { %v363_v11 = vld [vmem:[%s362_s10] sm:$0xff]  ;;  %2309 = vmatprep.subr.bf16.mxu1 %v2308_v12  ;;  %644 = vrot.lane.b32.xlu1 %v2987_v14, %s2733_s13  ;;  %v2994_v15 = vld [vmem:[%s362_s10 + $0x8] sm:$0xff]  ;;  %v2312_v3 = vpack.c.bf16 %v531_v1, %v530_v0  ;;  %v2316_v5 = vpack.c.bf16 %v533_v4, %v532_v2  ;;  %s2740_s26 = smov 112   ;;  %s2741_s10 = smov 28  }
  0x85   : > { %2204 = vmatprep.mubr.msk.f32.mxu0 %vm369_vm0, %v363_v11  ;;  %2215 = vmatprep.mubr.msk.f32.mxu1 %vm369_vm0, %v363_v11  ;;  %vm618_vm6 = vcmp.ge.s32.totalorder %v3081_v7, %v3086_v9  ;;  %s2742_s11 = smov 24   ;;  %s2743_s14 = smov 104  }
  0x86   : > { %2303 = vmatpush3.bf16.msra.mxu0 %v2300_v8  ;;  %626 = vrot.lane.b32.xlu0 %v2999_v16, %s2733_s13  ;;  %v3084_v8 = vadd.s32 8, %v3081_v7  ;;  %s355_s16 = sand.u32 1, %s2717_s28   ;;  %s2139_s19 = sshll.u32 %s2812_s9, 8 }
  0x87   : > { %2311 = vmatpush3.bf16.msra.mxu1 %v2308_v12  ;;  %2313 = vmatprep.subr.bf16.mxu0 %v2312_v3  ;;  %s2097_s12 = sshll.u32 %s355_s16, 4  ;;  %p3438_p11 = scmp.ne.s32.totalorder %s3423_s15, 0 }
  0x88   : > { %646 = vrot.lane.b32.xlu1 %v3004_v17, %s2733_s13  ;;  %vm619_vm4 = vcmp.ge.s32.totalorder %v3084_v8, %v3086_v9  ;;  %s357_s23 = scalar_lea.vmem [#allocation10], %s2097_s12 }
  0x89   : > { %2205 = vmatmul.mubr.msk.f32.vlgmr.msra.gmra.mrb[0].mxu0 %vm369_vm0, %v2994_v15  ;;  %s1982_s25 = sshll.u32 %s357_s23, 4  ;;  %s3353_s25 = int_to_ptr.vmem [resolvable:$true] %s1982_s25 }
  0x8a   : > { %2216 = vmatmul.mubr.msk.f32.vlgmr.msra.gmra.mrb[0].mxu1 %vm369_vm0, %v2994_v15  ;;  %2226 = vmatprep.mubr.msk.f32.mxu0 %vm369_vm0, %v363_v11  ;;  %s2651_s9 = scalar_lea.vmem %s3353_s25, 256 }
  0x8b   : > { %2315 = vmatpush3.bf16.msra.mxu0 %v2312_v3  ;;  %p2652_p8 = scmp.ne.s32.totalorder %s3353_s25, %s2651_s9 }
  0x8c   : > { %2317 = vmatprep.subr.bf16.mxu0 %v2316_v5 }
  0x8d   : > { %p2653_p13 = pnand %p2652_p8, %p3438_p11 }
  0x8f   : > { %2319 = vmatpush3.bf16.msra.mxu0 %v2316_v5  ;;  %p2654_p1 = pneg %p2653_p13 }
  0x92   : > { %2227 = vmatmul.mubr.msk.f32.vlgmr.msra.gmra.mrb[2].mxu0 %vm369_vm0, %v2994_v15 }
  0xf3   : > { %v625_v18 = vpop.permute.xlu0 %624 }
  0xf6   : > { %v645_v32 = vpop.permute.xlu1 %644 }
  0xf8   : > { %v627_v19 = vpop.permute.xlu0 %626 }
  0xfa   : > { %v647_v33 = vpop.permute.xlu1 %646 }
 0x15c   : > { %v3015_v20 = vpop.f32.mrb[0].mxu0 }
 0x15d   : > { %v3017_v21 = vpop.f32.mrb[0].mxu1  ;;  %v3019_v22 = vpop.f32.mrb[1].mxu0  ;;  %v653_v30 = vmul.f32 %v3015_v20, %v2999_v16  ;;  %v631_v31 = vmul.f32 %v3015_v20, %v627_v19  ;;  %v651_v56 = vmul.f32 %v3015_v20, %v647_v33  ;;  %v621_v58 = vmul.f32 %v3015_v20, %v3004_v17 }
 0x15e   : > { %v3021_v23 = vpop.f32.mrb[1].mxu1  ;;  %v670_v24 = vmul.f32 %v3017_v21, %v627_v19  ;;  %v684_v26 = vmul.f32 %v3017_v21, %v2999_v16  ;;  %v652_v28 = vmul.f32 %v2982_v13, %v3019_v22  ;;  %v630_v29 = vmul.f32 %v625_v18, %v3019_v22 }
 0x15f   : > { %v669_v25 = vmul.f32 %v625_v18, %v3021_v23  ;;  %v683_v27 = vmul.f32 %v2982_v13, %v3021_v23  ;;  %v668_v36 = vmul.f32 %v3017_v21, %v3004_v17  ;;  %v682_v37 = vmul.f32 %v3017_v21, %v647_v33 }
 0x160   : > { %675 = vrot.lane.b32.xlu1 %v670_v24, %s2734_s24  ;;  %v667_v38 = vmul.f32 %v2987_v14, %v3021_v23  ;;  %v681_v40 = vmul.f32 %v645_v32, %v3021_v23  ;;  %v650_v47 = vmul.f32 %v645_v32, %v3019_v22  ;;  %v620_v50 = vmul.f32 %v2987_v14, %v3019_v22 }
 0x161   : > { %673 = vrot.lane.b32.xlu0 %v669_v25, %s2734_s24 }
 0x164   : > { %689 = vrot.lane.b32.xlu1 %v684_v26, %s2733_s13 }
 0x165   : > { %687 = vrot.lane.b32.xlu0 %v683_v27, %s2733_s13 }
 0x168   : > { %656 = vrot.lane.b32.xlu1 %v652_v28, %s2733_s13 }
 0x169   : > { %634 = vrot.lane.b32.xlu0 %v630_v29, %s2734_s24 }
 0x16c   : > { %658 = vrot.lane.b32.xlu1 %v653_v30, %s2733_s13 }
 0x16d   : > { %636 = vrot.lane.b32.xlu0 %v631_v31, %s2734_s24 }
 0x170   : > { %903 = vrot.lane.b32.xlu1 %v2999_v16, %s2735_s22 }
 0x171   : > { %901 = vrot.lane.b32.xlu0 %v2982_v13, %s2735_s22 }
 0x174   : > { %929 = vrot.lane.b32.xlu1 %v2999_v16, %s2736_s29 }
 0x175   : > { %927 = vrot.lane.b32.xlu0 %v2982_v13, %s2736_s29 }
 0x1d2   : > { %v676_v34 = vpop.permute.xlu1 %675 }
 0x1d3   : > { %v674_v35 = vpop.permute.xlu0 %673  ;;  %v680_v41 = vadd.f32 %v676_v34, %v668_v36 }
 0x1d4   : > { %v679_v44 = vadd.f32 %v674_v35, %v667_v38 }
 0x1d6   : > { %v690_v39 = vpop.permute.xlu1 %689 }
 0x1d7   : > { %v694_v42 = vsub.f32 %v682_v37, %v690_v39  ;;  %v688_v43 = vpop.permute.xlu0 %687 }
 0x1d8   : > { %v693_v45 = vsub.f32 %v681_v40, %v688_v43 }
 0x1d9   : > { %v696_v46 = vsel %vm664_vm1, %v680_v41, %v694_v42 }
 0x1da   : > { %v695_v48 = vsel %vm664_vm1, %v679_v44, %v693_v45  ;;  %v657_v49 = vpop.permute.xlu1 %656 }
 0x1db   : > { %v2320_v52 = vpack.c.bf16 %v696_v46, %v695_v48  ;;  %v662_v53 = vsub.f32 %v650_v47, %v657_v49  ;;  %v635_v54 = vpop.permute.xlu0 %634  ;;  %v2228_v46 = vpop.f32.mrb[2].mxu0 }
 0x1dc   : > { %v640_v55 = vadd.f32 %v635_v54, %v620_v50  ;;  %v600_v48 = vpop.f32.mrb[3].mxu0 }
 0x1dd   : > { %2322 = vmatprep.subr.msk.bf16.mxu1 %vm3064_vm3, %v2320_v52 }
 0x1de   : > { %2325 = vmatpush3.bf16.xpose.msk.msra.mxu1 %vm3064_vm3, %v2320_v52  ;;  %v659_v57 = vpop.permute.xlu1 %658  ;;  %v665_v59 = vsel %vm664_vm1, %v640_v55, %v662_v53  ;;  %v2326_v52 = vpack.c.bf16 %v2228_v46, %v600_v48 }
 0x1df   : > { %v637_v60 = vpop.permute.xlu0 %636  ;;  %2233 = vmatprep.mubr.msk.f32.mxu1 %vm697_vm2, %v665_v59  ;;  %v663_v61 = vsub.f32 %v651_v56, %v659_v57 }
 0x1e0   : > { %v641_v62 = vadd.f32 %v637_v60, %v621_v58  ;;  %2327 = vmatprep.subr.bf16.mxu1 %v2326_v52 }
 0x1e2   : > { %v666_v63 = vsel %vm664_vm1, %v641_v62, %v663_v61  ;;  %v904_v26 = vpop.permute.xlu1 %903 }
 0x1e3   : > { %v902_v27 = vpop.permute.xlu0 %901  ;;  %v966_v28 = vmul.f32 %v3017_v21, %v904_v26  ;;  %v908_v37 = vmul.f32 %v3015_v20, %v904_v26 }
 0x1e4   : > { %v965_v32 = vmul.f32 %v902_v27, %v3021_v23  ;;  %v907_v36 = vmul.f32 %v902_v27, %v3019_v22 }
 0x1e5   : > { %2234 = vmatmul.mubr.msk.f32.vlgmr.msra.gmra.mrb[2].mxu1 %vm697_vm2, %v666_v63 }
 0x1e6   : > { %v930_v29 = vpop.permute.xlu1 %929  ;;  %2329 = vmatpush3.bf16.msra.mxu1 %v2326_v52 }
 0x1e7   : > { %v980_v30 = vmul.f32 %v3017_v21, %v930_v29  ;;  %v928_v31 = vpop.permute.xlu0 %927  ;;  %v934_v35 = vmul.f32 %v3015_v20, %v930_v29 }
 0x1e8   : > { %v933_v33 = vmul.f32 %v928_v31, %v3019_v22  ;;  %v979_v34 = vmul.f32 %v928_v31, %v3021_v23 }
 0x2b8   : > { %v2235_v10 = vpop.f32.mrb[2].mxu1 }
 0x2b9   : > { %v786_v11 = vmul.f32 0.35355338, %v2235_v10  ;;  %v776_v12 = vpop.f32.mrb[3].mxu1 }
 0x2ba   : > { %v785_v18 = vmul.f32 0.35355338, %v776_v12 }
 0x2bb   : > { %v3095_v15 = vsel %vm619_vm4, %v786_v11, -1e+30 }
 0x2bc   : > { %v793_v19 = vsel %vm789_vm5, %v3095_v15, -inf  ;;  %v787_v24 = vsel %vm618_vm6, %v785_v18, -1e+30 }
 0x2bd   : > { %794 = vmax.xlane.f32.xlu1 %v793_v19  ;;  %v790_v25 = vsel %vm789_vm5, %v787_v24, -inf }
 0x2be   : > { %791 = vmax.xlane.f32.xlu0 %v790_v25 }
 0x2ce   : > { %895 = vrot.lane.b32.xlu1 %v3004_v17, %s2736_s29 }
 0x2d2   : > { %921 = vrot.lane.b32.xlu1 %v3004_v17, %s2735_s22 }
 0x2d4   : > { %893 = vrot.lane.b32.xlu0 %v2987_v14, %s2736_s29 }
 0x2d6   : > { %971 = vrot.lane.b32.xlu1 %v966_v28, %s2734_s24  ;;  %v3141_v28 = vpack.i.bf16 %v2228_v46, %v600_v48 }
 0x2d8   : > { %919 = vrot.lane.b32.xlu0 %v2987_v14, %s2735_s22 }
 0x2da   : > { %985 = vrot.lane.b32.xlu1 %v980_v30, %s2733_s13 }
 0x2dc   : > { %969 = vrot.lane.b32.xlu0 %v965_v32, %s2734_s24 }
 0x2de   : > { %937 = vrot.lane.b32.xlu1 %v933_v33, %s2733_s13 }
 0x2e0   : > { %983 = vrot.lane.b32.xlu0 %v979_v34, %s2733_s13 }
 0x2e2   : > { %939 = vrot.lane.b32.xlu1 %v934_v35, %s2733_s13 }
 0x2e4   : > { %911 = vrot.lane.b32.xlu0 %v907_v36, %s2734_s24 }
 0x2e8   : > { %913 = vrot.lane.b32.xlu0 %v908_v37, %s2734_s24 }
 0x34a   : > { %v795_v38 = vpop.xlane.xlu1 %794 }
 0x34b   : > { %v792_v39 = vpop.xlane.xlu0 %791  ;;  %v797_v2 = vsub.f32 %v3095_v15, %v795_v38 }
 0x34c   : > { %v796_v0 = vsub.f32 %v787_v24, %v792_v39 }
 0x34d   : > { %v800_v3 = vmul.f32 1.442695, %v797_v2 }
 0x34e   : > { %v896_v40 = vpop.permute.xlu1 %895  ;;  %v798_v1 = vmul.f32 1.442695, %v796_v0 }
 0x34f   : > { %v900_v41 = vmul.f32 %v3015_v20, %v896_v40  ;;  %v894_v42 = vpop.permute.xlu0 %893  ;;  %v964_v47 = vmul.f32 %v3017_v21, %v896_v40 }
 0x350   : > { %v963_v49 = vmul.f32 %v894_v42, %v3021_v23  ;;  %2507 = vpow2.f32 %v798_v1  ;;  %v899_v12 = vmul.f32 %v894_v42, %v3019_v22 }
 0x351   : > { %2509 = vpow2.f32 %v800_v3 }
 0x352   : > { %v922_v43 = vpop.permute.xlu1 %921 }
 0x353   : > { %v926_v44 = vmul.f32 %v3015_v20, %v922_v43  ;;  %v920_v45 = vpop.permute.xlu0 %919  ;;  %v978_v56 = vmul.f32 %v3017_v21, %v922_v43 }
 0x354   : > { %v977_v57 = vmul.f32 %v920_v45, %v3021_v23  ;;  %v925_v25 = vmul.f32 %v920_v45, %v3019_v22 }
 0x356   : > { %v972_v50 = vpop.permute.xlu1 %971 }
 0x357   : > { %v976_v53 = vadd.f32 %v972_v50, %v964_v47  ;;  %v970_v54 = vpop.permute.xlu0 %969 }
 0x358   : > { %v975_v55 = vadd.f32 %v970_v54, %v963_v49 }
 0x35a   : > { %v2462_v58 = vpack.i.bf16 %v976_v53, %v975_v55  ;;  %v986_v59 = vpop.permute.xlu1 %985  ;;  %v2508_v4 = vpop.eup %2507 }
 0x35b   : > { %v990_v60 = vsub.f32 %v978_v56, %v986_v59  ;;  %v984_v61 = vpop.permute.xlu0 %983  ;;  %v802_v5 = vsel %vm789_vm5, %v2508_v4, 0.0  ;;  %v2510_v6 = vpop.eup %2509 }
 0x35c   : > { %v989_v62 = vsub.f32 %v977_v57, %v984_v61  ;;  %2463 = vrot.lane.b32.xlu0 %v2462_v58, %s2737_s17  ;;  %v805_v10 = vsel %vm789_vm5, %v2510_v6, 0.0 }
 0x35e   : > { %v2467_v63 = vpack.i.bf16 %v990_v60, %v989_v62  ;;  %v938_v18 = vpop.permute.xlu1 %937 }
 0x35f   : > { %v912_v11 = vpop.permute.xlu0 %911  ;;  %v943_v15 = vsub.f32 %v925_v25, %v938_v18 }
 0x360   : > { %2468 = vrot.lane.b32.xlu1 %v2467_v63, %s2737_s17  ;;  %v917_v19 = vadd.f32 %v912_v11, %v899_v12 }
 0x362   : > { %v940_v27 = vpop.permute.xlu1 %939 }
 0x363   : > { %v914_v24 = vpop.permute.xlu0 %913  ;;  %v944_v29 = vsub.f32 %v926_v44, %v940_v27 }
 0x364   : > { %v918_v26 = vadd.f32 %v914_v24, %v900_v41 }
 0x37b   : > { %803 = vadd.xlane.f32.xlu0 %v802_v5 }
 0x384   : > { %806 = vadd.xlane.f32.xlu1 %v805_v10 }
 0x391   : > { %947 = vrot.lane.b32.xlu0 %v917_v19, %s2737_s17 }
 0x395   : > { %955 = vrot.lane.b32.xlu1 %v943_v15, %s2737_s17  ;;  %949 = vrot.lane.b32.xlu0 %v918_v26, %s2737_s17 }
 0x399   : > { %957 = vrot.lane.b32.xlu1 %v944_v29, %s2737_s17  ;;  %1219 = vrot.lane.b32.xlu0 %v2982_v13, %s2738_s20 }
 0x39d   : > { %1245 = vrot.lane.b32.xlu0 %v2982_v13, %s2739_s18  ;;  %1221 = vrot.lane.b32.xlu1 %v2999_v16, %s2738_s20 }
 0x3a1   : > { %1247 = vrot.lane.b32.xlu1 %v2999_v16, %s2739_s18 }
 0x3ce   : > { %v2464_v30 = vpop.permute.xlu0 %2463 }
 0x3cf   : > { %v2466_v32 = vunpack.i.h.bf16 %v2464_v30  ;;  %v2465_v33 = vunpack.i.l.bf16 %v2464_v30 }
 0x3d2   : > { %v2469_v31 = vpop.permute.xlu1 %2468 }
 0x3d3   : > { %v2471_v34 = vunpack.i.h.bf16 %v2469_v31  ;;  %v2470_v35 = vunpack.i.l.bf16 %v2469_v31 }
 0x3d5   : > { %v1007_v36 = vsel %vm664_vm1, %v2465_v33, %v2470_v35  ;;  %v1008_v37 = vsel %vm664_vm1, %v2466_v32, %v2471_v34 }
 0x3d6   : > { %v2330_v38 = vpack.c.bf16 %v1008_v37, %v1007_v36 }
 0x3d8   : > { %2332 = vmatprep.subr.msk.bf16.mxu1 %vm3064_vm3, %v2330_v38 }
 0x408   : > { %v804_v39 = vpop.xlane.xlu0 %803 }
 0x409   : > { %2511 = vrcp.f32 %v804_v39 }
 0x40c   : > { %v948_v46 = vpop.permute.xlu0 %947 }
 0x410   : > { %v950_v49 = vpop.permute.xlu0 %949 }
 0x411   : > { %v807_v40 = vpop.xlane.xlu1 %806 }
 0x412   : > { %2513 = vrcp.f32 %v807_v40 }
 0x413   : > { %v2512_v41 = vpop.eup %2511 }
 0x414   : > { %v810_v42 = vmul.f32 %v2512_v41, %v2508_v4  ;;  %v1220_v63 = vpop.permute.xlu0 %1219 }
 0x415   : > { %v956_v44 = vpop.permute.xlu1 %955  ;;  %v1283_v4 = vmul.f32 %v1220_v63, %v3021_v23  ;;  %v1225_v11 = vmul.f32 %v1220_v63, %v3019_v22 }
 0x416   : > { %2240 = vmatprep.mubr.msk.f32.mxu1 %vm789_vm5, %v810_v42  ;;  %v961_v47 = vsel %vm664_vm1, %v948_v46, %v956_v44 }
 0x418   : > { %v1246_v3 = vpop.permute.xlu0 %1245 }
 0x419   : > { %v958_v48 = vpop.permute.xlu1 %957  ;;  %v1251_v5 = vmul.f32 %v1246_v3, %v3019_v22 }
 0x41a   : > { %v962_v50 = vsel %vm664_vm1, %v950_v49, %v958_v48 }
 0x41c   : > { %v2514_v43 = vpop.eup %2513 }
 0x41d   : > { %v811_v45 = vmul.f32 %v2514_v43, %v2510_v6  ;;  %v1222_v62 = vpop.permute.xlu1 %1221  ;;  %v1297_v6 = vmul.f32 %v1246_v3, %v3021_v23 }
 0x41e   : > { %v1284_v0 = vmul.f32 %v3017_v21, %v1222_v62  ;;  %v1226_v12 = vmul.f32 %v3015_v20, %v1222_v62 }
 0x41f   : > { %2241 = vmatmul.mubr.msk.f32.vlgmr.msra.gmra.mrb[4].mxu1 %vm789_vm5, %v811_v45 }
 0x420   : > { %2335 = vmatpush3.bf16.xpose.msk.msra.mxu1 %vm3064_vm3, %v2330_v38  ;;  %2247 = vmatprep.mubr.msk.f32.mxu1 %vm697_vm2, %v961_v47 }
 0x421   : > { %v1248_v1 = vpop.permute.xlu1 %1247 }
 0x422   : > { %v1298_v2 = vmul.f32 %v3017_v21, %v1248_v1  ;;  %v1252_v10 = vmul.f32 %v3015_v20, %v1248_v1 }
 0x427   : > { %2248 = vmatmul.mubr.msk.f32.vlgmr.msra.gmra.mrb[6].mxu1 %vm697_vm2, %v962_v50 }
 0x4f2   : > { %v3166_v52 = vpop.f32.mrb[4].mxu1 }
 0x4f3   : > { %v3168_v53 = vpop.f32.mrb[5].mxu1 }
 0x4fa   : > { %v2249_v54 = vpop.f32.mrb[6].mxu1 }
 0x4fb   : > { %v1097_v55 = vmul.f32 0.35355338, %v2249_v54  ;;  %v1087_v56 = vpop.f32.mrb[7].mxu1 }
 0x4fc   : > { %v1096_v57 = vmul.f32 0.35355338, %v1087_v56 }
 0x4fd   : > { %v3173_v58 = vsel %vm619_vm4, %v1097_v55, -1e+30 }
 0x4fe   : > { %v1103_v59 = vsel %vm789_vm5, %v3173_v58, -inf  ;;  %v3180_v60 = vsel %vm618_vm6, %v1096_v57, -1e+30 }
 0x4ff   : > { %1104 = vmax.xlane.f32.xlu1 %v1103_v59  ;;  %v1100_v61 = vsel %vm789_vm5, %v3180_v60, -inf }
 0x500   : > { %1101 = vmax.xlane.f32.xlu0 %v1100_v61 }
 0x510   : > { %1213 = vrot.lane.b32.xlu1 %v3004_v17, %s2739_s18 }
 0x514   : > { %1239 = vrot.lane.b32.xlu1 %v3004_v17, %s2738_s20 }
 0x516   : > { %1211 = vrot.lane.b32.xlu0 %v2987_v14, %s2739_s18 }
 0x518   : > { %1289 = vrot.lane.b32.xlu1 %v1284_v0, %s2734_s24 }
 0x51a   : > { %1237 = vrot.lane.b32.xlu0 %v2987_v14, %s2738_s20  ;;  %s3362_s20 = scalar_lea.sflag [#allocation4], %s355_s16 }
 0x51c   : > { %1303 = vrot.lane.b32.xlu1 %v1298_v2, %s2733_s13 }
 0x51e   : > { %1287 = vrot.lane.b32.xlu0 %v1283_v4, %s2734_s24 }
 0x520   : > { %1255 = vrot.lane.b32.xlu1 %v1251_v5, %s2733_s13 }
 0x522   : > { %1301 = vrot.lane.b32.xlu0 %v1297_v6, %s2733_s13 }
 0x524   : > { %1257 = vrot.lane.b32.xlu1 %v1252_v10, %s2733_s13 }
 0x526   : > { %1229 = vrot.lane.b32.xlu0 %v1225_v11, %s2734_s24 }
 0x52a   : > { %1231 = vrot.lane.b32.xlu0 %v1226_v12, %s2734_s24 }
 0x52e   : > { %2473 = vrot.lane.b32.xlu0 %v3141_v28, %s2737_s17  ;;  %s3358_s17 = scalar_lea.hbm %s3412_s8, %s2139_s19 }
 0x58c   : > { %v1105_v18 = vpop.xlane.xlu1 %1104 }
 0x58d   : > { %v1102_v19 = vpop.xlane.xlu0 %1101  ;;  %v1107_v57 = vsub.f32 %v3173_v58, %v1105_v18 }
 0x58e   : > { %v1106_v54 = vsub.f32 %v3180_v60, %v1102_v19 }
 0x58f   : > { %v1110_v59 = vmul.f32 1.442695, %v1107_v57 }
 0x590   : > { %v1214_v24 = vpop.permute.xlu1 %1213  ;;  %v1108_v56 = vmul.f32 1.442695, %v1106_v54 }
 0x591   : > { %v1218_v25 = vmul.f32 %v3015_v20, %v1214_v24  ;;  %v1212_v15 = vpop.permute.xlu0 %1211  ;;  %v1282_v30 = vmul.f32 %v3017_v21, %v1214_v24 }
 0x592   : > { %v1281_v31 = vmul.f32 %v1212_v15, %v3021_v23  ;;  %v1217_v43 = vmul.f32 %v1212_v15, %v3019_v22  ;;  %2515 = vpow2.f32 %v1108_v56 }
 0x593   : > { %2517 = vpow2.f32 %v1110_v59 }
 0x594   : > { %v1240_v26 = vpop.permute.xlu1 %1239 }
 0x595   : > { %v1244_v27 = vmul.f32 %v3015_v20, %v1240_v26  ;;  %v1238_v29 = vpop.permute.xlu0 %1237  ;;  %v1296_v36 = vmul.f32 %v3017_v21, %v1240_v26 }
 0x596   : > { %v1295_v37 = vmul.f32 %v1238_v29, %v3021_v23  ;;  %v1243_v60 = vmul.f32 %v1238_v29, %v3019_v22 }
 0x598   : > { %v1290_v32 = vpop.permute.xlu1 %1289 }
 0x599   : > { %v1294_v33 = vadd.f32 %v1290_v32, %v1282_v30  ;;  %v1288_v34 = vpop.permute.xlu0 %1287 }
 0x59a   : > { %v1293_v35 = vadd.f32 %v1288_v34, %v1281_v31 }
 0x59c   : > { %v2477_v38 = vpack.i.bf16 %v1294_v33, %v1293_v35  ;;  %v1304_v39 = vpop.permute.xlu1 %1303  ;;  %v2516_v61 = vpop.eup %2515 }
 0x59d   : > { %v1308_v40 = vsub.f32 %v1296_v36, %v1304_v39  ;;  %v1302_v41 = vpop.permute.xlu0 %1301  ;;  %v1112_v62 = vsel %vm789_vm5, %v2516_v61, 0.0  ;;  %v2518_v63 = vpop.eup %2517 }
 0x59e   : > { %v1307_v42 = vsub.f32 %v1295_v37, %v1302_v41  ;;  %2478 = vrot.lane.b32.xlu1 %v2477_v38, %s2740_s26  ;;  %v1115_v0 = vsel %vm789_vm5, %v2518_v63, 0.0 }
 0x5a0   : > { %v2482_v44 = vpack.i.bf16 %v1308_v40, %v1307_v42  ;;  %v1256_v1 = vpop.permute.xlu1 %1255 }
 0x5a1   : > { %v1230_v45 = vpop.permute.xlu0 %1229  ;;  %v1261_v2 = vsub.f32 %v1243_v60, %v1256_v1 }
 0x5a2   : > { %v1235_v46 = vadd.f32 %v1230_v45, %v1217_v43  ;;  %2483 = vrot.lane.b32.xlu0 %v2482_v44, %s2740_s26 }
 0x5a4   : > { %1265 = vrot.lane.b32.xlu1 %v1235_v46, %s2740_s26  ;;  %v1258_v3 = vpop.permute.xlu1 %1257 }
 0x5a5   : > { %v1232_v47 = vpop.permute.xlu0 %1231  ;;  %v1262_v58 = vsub.f32 %v1244_v27, %v1258_v3 }
 0x5a6   : > { %v1236_v4 = vadd.f32 %v1232_v47, %v1218_v25 }
 0x5a9   : > { %v2474_v48 = vpop.permute.xlu0 %2473 }
 0x5aa   : > { %v2476_v49 = vunpack.i.h.bf16 %v2474_v48  ;;  %v2475_v50 = vunpack.i.l.bf16 %v2474_v48 }
 0x5ac   : > { %v2336_v55 = vpack.c.bf16 %v2476_v49, %v2475_v50 }
 0x5ae   : > { %2337 = vmatprep.subr.bf16.mxu0 %v2336_v55 }
 0x5af   : > { %2339 = vmatpush3.bf16.msra.mxu0 %v2336_v55 }
 0x5c1   : > { %1113 = vadd.xlane.f32.xlu0 %v1112_v62 }
 0x5c8   : > { %1116 = vadd.xlane.f32.xlu1 %v1115_v0 }
 0x5d7   : > { %1273 = vrot.lane.b32.xlu0 %v1261_v2, %s2740_s26 }
 0x5d9   : > { %1267 = vrot.lane.b32.xlu1 %v1236_v4, %s2740_s26 }
 0x5db   : > { %1275 = vrot.lane.b32.xlu0 %v1262_v58, %s2740_s26 }
 0x5dd   : > { %1535 = vrot.lane.b32.xlu1 %v2982_v13, %s2741_s10 }
 0x5df   : > { %1537 = vrot.lane.b32.xlu0 %v2999_v16, %s2741_s10 }
 0x5e1   : > { %1561 = vrot.lane.b32.xlu1 %v2982_v13, %s2742_s11 }
 0x5e3   : > { %1563 = vrot.lane.b32.xlu0 %v2999_v16, %s2742_s11 }
 0x610   : > { %v2479_v5 = vpop.permute.xlu1 %2478 }
 0x611   : > { %v2481_v10 = vunpack.i.h.bf16 %v2479_v5  ;;  %v2480_v11 = vunpack.i.l.bf16 %v2479_v5 }
 0x614   : > { %v2484_v6 = vpop.permute.xlu0 %2483 }
 0x615   : > { %v2486_v12 = vunpack.i.h.bf16 %v2484_v6  ;;  %v2485_v18 = vunpack.i.l.bf16 %v2484_v6 }
 0x616   : > { %v1266_v13 = vpop.permute.xlu1 %1265 }
 0x617   : > { %v1326_v19 = vsel %vm664_vm1, %v2481_v10, %v2486_v12  ;;  %v1325_v24 = vsel %vm664_vm1, %v2480_v11, %v2485_v18 }
 0x618   : > { %v2340_v25 = vpack.c.bf16 %v1326_v19, %v1325_v24 }
 0x61a   : > { %2342 = vmatprep.subr.msk.bf16.mxu0 %vm3064_vm3, %v2340_v25 }
 0x64e   : > { %v1114_v15 = vpop.xlane.xlu0 %1113 }
 0x64f   : > { %2519 = vrcp.f32 %v1114_v15 }
 0x652   : > { %v1274_v30 = vpop.permute.xlu0 %1273 }
 0x653   : > { %v1279_v32 = vsel %vm664_vm1, %v1266_v13, %v1274_v30 }
 0x655   : > { %v1117_v26 = vpop.xlane.xlu1 %1116 }
 0x656   : > { %2521 = vrcp.f32 %v1117_v26  ;;  %v1276_v34 = vpop.permute.xlu0 %1275 }
 0x659   : > { %v2520_v16 = vpop.eup %2519  ;;  %v1268_v33 = vpop.permute.xlu1 %1267 }
 0x65a   : > { %v1120_v27 = vmul.f32 %v2520_v16, %v2516_v61  ;;  %v1280_v35 = vsel %vm664_vm1, %v1268_v33, %v1276_v34  ;;  %v1538_v47 = vpop.permute.xlu0 %1537 }
 0x65b   : > { %v1600_v50 = vmul.f32 %v3017_v21, %v1538_v47 }
 0x65c   : > { %2254 = vmatprep.mubr.msk.f32.mxu0 %vm789_vm5, %v1120_v27 }
 0x65d   : > { %v1536_v46 = vpop.permute.xlu1 %1535 }
 0x65e   : > { %v1599_v48 = vmul.f32 %v1536_v46, %v3021_v23  ;;  %v1564_v55 = vpop.permute.xlu0 %1563 }
 0x65f   : > { %v1614_v56 = vmul.f32 %v3017_v21, %v1564_v55  ;;  %v1568_v59 = vmul.f32 %v3015_v20, %v1564_v55 }
 0x660   : > { %v2522_v29 = vpop.eup %2521 }
 0x661   : > { %v1121_v31 = vmul.f32 %v2522_v29, %v2518_v63  ;;  %v1562_v49 = vpop.permute.xlu1 %1561 }
 0x662   : > { %v1613_v54 = vmul.f32 %v1562_v49, %v3021_v23  ;;  %v1567_v57 = vmul.f32 %v1562_v49, %v3019_v22 }
 0x663   : > { %2255 = vmatmul.mubr.msk.f32.vlgmr.msra.gmra.mrb[4].mxu0 %vm789_vm5, %v1121_v31 }
 0x664   : > { %2345 = vmatpush3.bf16.xpose.msk.msra.mxu0 %vm3064_vm3, %v2340_v25  ;;  %2261 = vmatprep.mubr.msk.f32.mxu0 %vm697_vm2, %v1279_v32 }
 0x66b   : > { %2262 = vmatmul.mubr.msk.f32.vlgmr.msra.gmra.mrb[6].mxu0 %vm697_vm2, %v1280_v35 }
 0x736   : > { %v3248_v36 = vpop.f32.mrb[4].mxu0 }
 0x737   : > { %v3250_v37 = vpop.f32.mrb[5].mxu0 }
 0x73e   : > { %v2263_v38 = vpop.f32.mrb[6].mxu0 }
 0x73f   : > { %v1415_v39 = vmul.f32 0.35355338, %v2263_v38  ;;  %v1405_v40 = vpop.f32.mrb[7].mxu0 }
 0x740   : > { %v1414_v41 = vmul.f32 0.35355338, %v1405_v40 }
 0x741   : > { %v1417_v42 = vsel %vm619_vm4, %v1415_v39, -1e+30 }
 0x742   : > { %v1421_v43 = vsel %vm789_vm5, %v1417_v42, -inf  ;;  %v3259_v44 = vsel %vm618_vm6, %v1414_v41, -1e+30 }
 0x743   : > { %1422 = vmax.xlane.f32.xlu0 %v1421_v43  ;;  %v1418_v45 = vsel %vm789_vm5, %v3259_v44, -inf }
 0x744   : > { %1419 = vmax.xlane.f32.xlu1 %v1418_v45 }
 0x755   : > { %1529 = vrot.lane.b32.xlu1 %v3004_v17, %s2742_s11 }
 0x759   : > { %1527 = vrot.lane.b32.xlu0 %v2987_v14, %s2742_s11  ;;  %1553 = vrot.lane.b32.xlu1 %v2987_v14, %s2741_s10  ;;  %v1541_v14 = vmul.f32 %v1536_v46, %v3019_v22 }
 0x75d   : > { %1555 = vrot.lane.b32.xlu0 %v3004_v17, %s2741_s10  ;;  %1603 = vrot.lane.b32.xlu1 %v1599_v48, %s2734_s24  ;;  %v1542_v17 = vmul.f32 %v3015_v20, %v1538_v47 }
 0x761   : > { %1605 = vrot.lane.b32.xlu0 %v1600_v50, %s2734_s24  ;;  %1617 = vrot.lane.b32.xlu1 %v1613_v54, %s2733_s13 }
 0x765   : > { %1619 = vrot.lane.b32.xlu0 %v1614_v56, %s2733_s13  ;;  %1545 = vrot.lane.b32.xlu1 %v1541_v14, %s2734_s24 }
 0x769   : > { %1571 = vrot.lane.b32.xlu0 %v1567_v57, %s2733_s13  ;;  %1547 = vrot.lane.b32.xlu1 %v1542_v17, %s2734_s24 }
 0x76d   : > { %1573 = vrot.lane.b32.xlu0 %v1568_v59, %s2733_s13 }
 0x771   : > { %2488 = vrot.lane.b32.xlu0 %v3141_v28, %s2740_s26 }
 0x7d0   : > { %v1423_v61 = vpop.xlane.xlu0 %1422 }
 0x7d1   : > { %v1425_v62 = vsub.f32 %v1417_v42, %v1423_v61  ;;  %v1420_v63 = vpop.xlane.xlu1 %1419 }
 0x7d2   : > { %v1424_v43 = vsub.f32 %v3259_v44, %v1420_v63 }
 0x7d3   : > { %v1428_v0 = vmul.f32 1.442695, %v1425_v62 }
 0x7d4   : > { %v1528_v1 = vpop.permute.xlu0 %1527  ;;  %v1426_v46 = vmul.f32 1.442695, %v1424_v43  ;;  %v1877_v43 = vld [vmem:[#allocation8 + $0x18] sm:$0xff] }
 0x7d5   : > { %2523 = vpow2.f32 %v1428_v0  ;;  %v1530_v60 = vpop.permute.xlu1 %1529  ;;  %v1597_v5 = vmul.f32 %v1528_v1, %v3021_v23  ;;  %v1533_v39 = vmul.f32 %v1528_v1, %v3019_v22 }
 0x7d6   : > { %v1598_v58 = vmul.f32 %v3017_v21, %v1530_v60  ;;  %v1534_v42 = vmul.f32 %v3015_v20, %v1530_v60  ;;  %2525 = vpow2.f32 %v1426_v46 }
 0x7d8   : > { %v1556_v2 = vpop.permute.xlu0 %1555 }
 0x7d9   : > { %v1560_v3 = vmul.f32 %v3015_v20, %v1556_v2  ;;  %v1554_v4 = vpop.permute.xlu1 %1553  ;;  %v1612_v19 = vmul.f32 %v3017_v21, %v1556_v2 }
 0x7da   : > { %v1611_v24 = vmul.f32 %v1554_v4, %v3021_v23  ;;  %v1559_v31 = vmul.f32 %v1554_v4, %v3019_v22 }
 0x7dc   : > { %v1606_v6 = vpop.permute.xlu0 %1605 }
 0x7dd   : > { %v1610_v10 = vadd.f32 %v1606_v6, %v1598_v58  ;;  %v1604_v11 = vpop.permute.xlu1 %1603 }
 0x7de   : > { %v1609_v12 = vadd.f32 %v1604_v11, %v1597_v5 }
 0x7df   : > { %v2524_v18 = vpop.eup %2523 }
 0x7e0   : > { %v2492_v25 = vpack.i.bf16 %v1610_v10, %v1609_v12  ;;  %v1620_v15 = vpop.permute.xlu0 %1619  ;;  %v1433_v13 = vsel %vm789_vm5, %v2524_v18, 0.0  ;;  %v2526_v47 = vpop.eup %2525 }
 0x7e1   : > { %v1624_v26 = vsub.f32 %v1612_v19, %v1620_v15  ;;  %1434 = vadd.xlane.f32.xlu0 %v1433_v13  ;;  %v1618_v16 = vpop.permute.xlu1 %1617  ;;  %v1430_v48 = vsel %vm789_vm5, %v2526_v47, 0.0 }
 0x7e2   : > { %v1623_v27 = vsub.f32 %v1611_v24, %v1618_v16  ;;  %2493 = vrot.lane.b32.xlu1 %v2492_v25, %s2743_s14 }
 0x7e4   : > { %v2497_v29 = vpack.i.bf16 %v1624_v26, %v1623_v27  ;;  %v1572_v30 = vpop.permute.xlu0 %1571 }
 0x7e5   : > { %v1577_v21 = vsub.f32 %v1559_v31, %v1572_v30  ;;  %v1546_v38 = vpop.permute.xlu1 %1545 }
 0x7e6   : > { %2498 = vrot.lane.b32.xlu1 %v2497_v29, %s2743_s14  ;;  %v1551_v40 = vadd.f32 %v1546_v38, %v1533_v39  ;;  %v1874_v39 = vld [vmem:[#allocation8] sm:$0xff] }
 0x7e8   : > { %v1574_v32 = vpop.permute.xlu0 %1573 }
 0x7e9   : > { %v1548_v41 = vpop.permute.xlu1 %1547  ;;  %v1578_v49 = vsub.f32 %v1560_v3, %v1574_v32 }
 0x7ea   : > { %1589 = vrot.lane.b32.xlu1 %v1577_v21, %s2743_s14  ;;  %v1552_v45 = vadd.f32 %v1548_v41, %v1534_v42  ;;  %v1876_v41 = vld [vmem:[#allocation8 + $0x10] sm:$0xff] }
 0x7ec   : > { %v2489_v23 = vpop.permute.xlu0 %2488 }
 0x7ed   : > { %v2491_v33 = vunpack.i.h.bf16 %v2489_v23  ;;  %v2490_v34 = vunpack.i.l.bf16 %v2489_v23 }
 0x7ef   : > { %v2346_v35 = vpack.c.bf16 %v2491_v33, %v2490_v34 }
 0x7f1   : > { %2347 = vmatprep.subr.bf16.mxu1 %v2346_v35 }
 0x7f2   : > { %2349 = vmatpush3.bf16.msra.mxu1 %v2346_v35 }
 0x7f7   : > { %1581 = vrot.lane.b32.xlu0 %v1551_v40, %s2743_s14  ;;  %v1875_v40 = vld [vmem:[#allocation8 + $0x8] sm:$0xff] }
 0x7f8   : > { %v2360_v42 = vpack.c.bf16 %v1875_v40, %v1874_v39 }
 0x7fb   : > { %1583 = vrot.lane.b32.xlu0 %v1552_v45, %s2743_s14 }
 0x80e   : > { %1431 = vadd.xlane.f32.xlu1 %v1430_v48 }
 0x81f   : > { %1591 = vrot.lane.b32.xlu1 %v1578_v49, %s2743_s14 }
 0x854   : > { %v2494_v22 = vpop.permute.xlu1 %2493 }
 0x855   : > { %v2496_v54 = vunpack.i.h.bf16 %v2494_v22  ;;  %v2495_v20 = vunpack.i.l.bf16 %v2494_v22 }
 0x858   : > { %v2499_v50 = vpop.permute.xlu1 %2498 }
 0x859   : > { %v2501_v55 = vunpack.i.h.bf16 %v2499_v50  ;;  %v2500_v14 = vunpack.i.l.bf16 %v2499_v50 }
 0x85b   : > { %v1641_v44 = vsel %vm664_vm1, %v2495_v20, %v2500_v14  ;;  %v1642_v56 = vsel %vm664_vm1, %v2496_v54, %v2501_v55 }
 0x85c   : > { %v2350_v17 = vpack.c.bf16 %v1642_v56, %v1641_v44  ;;  %v1590_v57 = vpop.permute.xlu1 %1589 }
 0x85e   : > { %2352 = vmatprep.subr.msk.bf16.mxu1 %vm3064_vm3, %v2350_v17 }
 0x86e   : > { %v1435_v59 = vpop.xlane.xlu0 %1434 }
 0x86f   : > { %2527 = vrcp.f32 %v1435_v59 }
 0x872   : > { %v1582_v0 = vpop.permute.xlu0 %1581 }
 0x873   : > { %v1595_v2 = vsel %vm664_vm1, %v1582_v0, %v1590_v57 }
 0x876   : > { %v1584_v4 = vpop.permute.xlu0 %1583 }
 0x879   : > { %v2528_v62 = vpop.eup %2527 }
 0x87a   : > { %v1439_v60 = vmul.f32 %v2528_v62, %v2524_v18 }
 0x89b   : > { %v1432_v61 = vpop.xlane.xlu1 %1431 }
 0x89c   : > { %2529 = vrcp.f32 %v1432_v61 }
 0x89f   : > { %v1592_v3 = vpop.permute.xlu1 %1591 }
 0x8a0   : > { %v1596_v58 = vsel %vm664_vm1, %v1584_v4, %v1592_v3 }
 0x8a6   : > { %v2530_v63 = vpop.eup %2529 }
 0x8a7   : > { %v1438_v1 = vmul.f32 %v2530_v63, %v2526_v47 }
 0x8a9   : > { %2268 = vmatprep.mubr.msk.f32.mxu1 %vm789_vm5, %v1438_v1 }
 0x8aa   : > { %2269 = vmatmul.mubr.msk.f32.vlgmr.msra.gmra.mrb[8].mxu1 %vm789_vm5, %v1439_v60 }
 0x8ab   : > { %2355 = vmatpush3.bf16.xpose.msk.msra.mxu1 %vm3064_vm3, %v2350_v17  ;;  %2275 = vmatprep.mubr.msk.f32.mxu1 %vm697_vm2, %v1595_v2 }
 0x8b2   : > { %2276 = vmatmul.mubr.msk.f32.vlgmr.msra.gmra.mrb[10].mxu1 %vm697_vm2, %v1596_v58 }
 0x97d   : > { %v2270_v5 = vpop.f32.mrb[8].mxu1 }
 0x97e   : > { %v1518_v6 = vpop.f32.mrb[9].mxu1 }
 0x985   : > { %v2277_v10 = vpop.f32.mrb[10].mxu1 }
 0x986   : > { %v1731_v11 = vmul.f32 0.35355338, %v2277_v10  ;;  %v1721_v12 = vpop.f32.mrb[11].mxu1 }
 0x987   : > { %v1730_v18 = vmul.f32 0.35355338, %v1721_v12 }
 0x988   : > { %v1733_v19 = vsel %vm619_vm4, %v1731_v11, -1e+30 }
 0x989   : > { %v1737_v51 = vsel %vm789_vm5, %v1733_v19, -inf  ;;  %v1732_v24 = vsel %vm618_vm6, %v1730_v18, -1e+30 }
 0x98a   : > { %1738 = vmax.xlane.f32.xlu1 %v1737_v51  ;;  %v1734_v25 = vsel %vm789_vm5, %v1732_v24, -inf }
 0x98b   : > { %1735 = vmax.xlane.f32.xlu0 %v1734_v25 }
 0x99b   : > { %2503 = vrot.lane.b32.xlu1 %v3141_v28, %s2743_s14 }
 0x99f   : > { %1847 = vrot.lane.b32.xlu1 %v3248_v36, %s2736_s29 }
 0x9a3   : > { %1853 = vrot.lane.b32.xlu1 %v1518_v6, %s2739_s18 }
 0xa17   : > { %v1739_v8 = vpop.xlane.xlu1 %1738 }
 0xa18   : > { %v1741_v15 = vsub.f32 %v1733_v19, %v1739_v8  ;;  %v1736_v13 = vpop.xlane.xlu0 %1735 }
 0xa19   : > { %v1740_v26 = vsub.f32 %v1732_v24, %v1736_v13 }
 0xa1a   : > { %v1744_v16 = vmul.f32 1.442695, %v1741_v15 }
 0xa1b   : > { %v1742_v27 = vmul.f32 1.442695, %v1740_v26  ;;  %v2504_v7 = vpop.permute.xlu1 %2503 }
 0xa1c   : > { %v2506_v9 = vunpack.i.h.bf16 %v2504_v7  ;;  %v2505_v29 = vunpack.i.l.bf16 %v2504_v7 }
 0xa1d   : > { %2531 = vpow2.f32 %v1742_v27 }
 0xa1e   : > { %v2356_v30 = vpack.c.bf16 %v2506_v9, %v2505_v29  ;;  %2533 = vpow2.f32 %v1744_v16 }
 0xa1f   : > { %v1848_v48 = vpop.permute.xlu1 %1847 }
 0xa20   : > { %2357 = vmatprep.subr.bf16.mxu0 %v2356_v30  ;;  %v1868_v20 = vsel %vm697_vm2, %v3166_v52, %v1848_v48 }
 0xa21   : > { %2359 = vmatpush3.bf16.msra.mxu0 %v2356_v30 }
 0xa22   : > { %2361 = vmatprep.subr.bf16.mxu0 %v2360_v42 }
 0xa23   : > { %v1854_v22 = vpop.permute.xlu1 %1853 }
 0xa27   : > { %v2532_v28 = vpop.eup %2531 }
 0xa28   : > { %v1746_v31 = vsel %vm789_vm5, %v2532_v28, 0.0  ;;  %v2534_v36 = vpop.eup %2533 }
 0xa29   : > { %1747 = vadd.xlane.f32.xlu0 %v1746_v31  ;;  %v1749_v21 = vsel %vm789_vm5, %v2534_v36, 0.0 }
 0xa2d   : > { %1750 = vadd.xlane.f32.xlu0 %v1749_v21 }
 0xa43   : > { %1845 = vrot.lane.b32.xlu0 %v3250_v37, %s2736_s29  ;;  %v2364_v37 = vpack.c.bf16 %v1877_v43, %v1876_v41 }
 0xa47   : > { %1855 = vrot.lane.b32.xlu0 %v2270_v5, %s2739_s18  ;;  %s2744_s18 = smov [#allocation10]  }
 0xa48   : > { %s2655_s26 = sshll.u32 %s2744_s18, 4  ;;  %s2656_s26 = int_to_ptr.vmem [resolvable:$false] %s2655_s26 }
 0xa49   : > { %s2657_s10 = scalar_lea.vmem %s2656_s26, 512  ;;  %p2658_p6 = scmp.lt.s32.totalorder %s3353_s25, %s2656_s26 }
 0xa4a   : > { %p2659_p9 = scmp.lt.s32.totalorder %s2657_s10, %s2651_s9 }
 0xa4c   : > { %p2660_p5 = por %p2659_p9, %p2658_p6 }
 0xa4e   : > { %p2661_p0 = pnand %p2660_p5, %p2654_p1 }
 0xab6   : > { %v1748_v32 = vpop.xlane.xlu0 %1747 }
 0xab7   : > { %2535 = vrcp.f32 %v1748_v32 }
 0xaba   : > { %v1751_v23 = vpop.xlane.xlu0 %1750 }
 0xabb   : > { %2537 = vrcp.f32 %v1751_v23 }
 0xabe   : > { %v1846_v47 = vpop.permute.xlu0 %1845 }
 0xabf   : > { %v1867_v50 = vsel %vm697_vm2, %v3168_v53, %v1846_v47  ;;  %v2130_v53 = vld [vmem:[%s3409_s5] ss:$0 sm:$0xff] }
 0xac0   : > { %v1869_v14 = vsel %vm789_vm5, %v1867_v50, %v1854_v22 }
 0xac1   : > { %v2536_v33 = vpop.eup %2535 }
 0xac2   : > { %v1754_v34 = vmul.f32 %v2536_v33, %v2532_v28  ;;  %v1856_v49 = vpop.permute.xlu0 %1855 }
 0xac3   : > { %v1870_v44 = vsel %vm789_vm5, %v1868_v20, %v1856_v49 }
 0xac4   : > { %2282 = vmatprep.mubr.msk.f32.mxu0 %vm789_vm5, %v1754_v34 }
 0xac5   : > { %v2538_v35 = vpop.eup %2537 }
 0xac6   : > { %v1755_v38 = vmul.f32 %v2538_v35, %v2534_v36 }
 0xac8   : > { %2283 = vmatmul.mubr.msk.f32.vlgmr.msra.gmra.mrb[8].mxu0 %vm789_vm5, %v1755_v38 }
 0xac9   : > { %2363 = vmatpush3.bf16.msra.mxu0 %v2360_v42 }
 0xaca   : > { %2365 = vmatprep.subr.bf16.mxu0 %v2364_v37 }
 0xacd   : > { %2367 = vmatpush3.bf16.msra.mxu0 %v2364_v37 }
 0xb9b   : > { %v2284_v45 = vpop.f32.mrb[8].mxu0 }
 0xb9c   : > { %1863 = vrot.lane.b32.xlu0 %v2284_v45, %s2742_s11  ;;  %v1834_v46 = vpop.f32.mrb[9].mxu0 }
 0xb9d   : > { %1861 = vrot.lane.b32.xlu1 %v1834_v46, %s2742_s11 }
 0xc0e   : > { %v1864_v54 = vpop.permute.xlu0 %1863 }
 0xc0f   : > { %v1862_v55 = vpop.permute.xlu1 %1861  ;;  %v1873_v17 = vsel %vm1871_vm7, %v1870_v44, %v1864_v54 }
 0xc10   : > { %v1872_v56 = vsel %vm1871_vm7, %v1869_v14, %v1862_v55 }
 0xc11   : > { %2293 = vmatprep.mubr.msk.f32.mxu0 %vm369_vm0, %v1872_v56 }
 0xc12   : > { %2294 = vmatmul.mubr.msk.f32.vlgmr.msra.gmra.mrb[10].mxu0 %vm369_vm0, %v1873_v17 }
 0xce5   : > { %v2295_v52 = vpop.f32.mrb[10].mxu0 }
 0xce6   : > { %v1963_v57 = vadd.f32 %v2295_v52, %v2130_v53  ;;  %v1957_v59 = vpop.f32.mrb[11].mxu0 }
 0xce7   : > { %v1958_v61 = vadd.f32 %v2130_v53, %v1957_v59 }
 0xce8   : > { %1967 = vst.msk [vmem:[%s357_s23 + $0x8] sm:$0xff] %vm369_vm0, %v1963_v57 }
 0xce9   : > { %1966 = vst.msk [vmem:[%s357_s23] sm:$0xff] %vm369_vm0, %v1958_v61 }
 0xcea   : > { %2664 = shalt.err (!%p2661_p0)
}
 0xceb   : > { %s2665_s11 = scalar_lea.hbm %s3358_s17, 256  ;;  %s2669_s12 = scalar_lea.hbm %s3412_s8, 512 }
 0xcec   : > { %p2666_p10 = scmp.ne.s32.totalorder %s3358_s17, %s2665_s11  ;;  %p2670_p4 = scmp.lt.u32.totalorder %s3358_s17, %s3412_s8 }
 0xced   : > { %p2671_p12 = scmp.lt.u32.totalorder %s2669_s12, %s2665_s11  ;;  %p2673_p8 = scmp.lt.u32.totalorder %s2665_s11, %s3358_s17 }
 0xcee   : > { %p2667_p2 = pnand %p2666_p10, %p3438_p11 }
 0xcef   : > { %p2672_p7 = por %p2671_p12, %p2670_p4 }
 0xcf0   : > { %p2668_p3 = pneg %p2667_p2 }
 0xcf1   : > { %p2674_p13 = por %p2673_p8, %p2672_p7 }
 0xcf3   : > { %p2675_p1 = pnand %p2674_p13, %p2668_p3 }
 0xcf5   : > { %2678 = shalt.err (!%p2675_p1)
}
 0xcf6   : > { %s2745_s23 = smov 128  }
 0xcf7   : > { %2384 = dma.vmem_to_hbm [thread:$0]  (%p3438_p11), %s3353_s25, 256, %s3358_s17, %s3362_s20, %s2745_s23, %s2745_s23, %s2736_s29  }
 0xcf8 PF: > { %s3439_s19 = sld [smem:[#allocation18_spill]]  ;;  %p2411_p6 = scmp.ge.s32.totalorder %s2725_s30, 2 }
 0xcf9   : > { %s1997_s24 = sand.u32 1, %s2713_s27  }
 0xcfa   : > { %s1998_s22 = scalar_lea.sflag [#allocation4], %s1997_s24 }
 0xcfe   : > { %p3440_p9 = scmp.ne.s32.totalorder %s3439_s19, 0 }
 0xd00   : > { %p2400_p5 = pnand %p2411_p6, %p3440_p9 }
 0xd02   : > { %2708 = dma.done.wait (!%p2400_p5), %s1998_s22, 256  }
 0xd03   : > { %2710 = vsyncadd (!%p2400_p5), %s1998_s22, 4294967040  ;;  %s3441_s30 = sld [smem:[#allocation16_spill]]  ;;  %s3442_s9 = sld [smem:[#allocation15_spill]] }
 0xd04   : > { %s3443_s29 = sld [smem:[#allocation17_spill]]  ;;  %s3444_s27 = smov %s2717_s28 }
 0xd09   : > { %p21_p0 = scmp.ge.s32.totalorder %s3441_s30, 4   ;;  %s3445_s28 = smov %s3442_s9 }
 0xd0b   :  { %23 = sbr.rel (!%p21_p0) target bundleno = 6 (0x6), region = 104 }
 0xd12   :  { %2003 = vsyncpa [#allocation3], 1 }
 0xd13   :  { %2005 = vsyncpa [#allocation3 + $0x1], 1 }
 0xd14   :  { %2006 = vsyncpa [#allocation6], 1 }
 0xd15   :  { %2007 = vsyncpa [#allocation9], 1 }
 0xd16   :  { %2008 = vsyncpa [#allocation4], 1 }
 0xd17   :  { %2010 = vsyncpa [#allocation4 + $0x1], 1 }

</bundles_post_ra>
